<compile_context>
chip_gen: v6e
topology: v6e:2x2x1
jax: 0.10.0
libtpu: 0.0.40
codegen_flags: <defaults>
</compile_context>

<pallas_src>
import math

import jax
import jax.numpy as jnp
from jax import lax
from jax.experimental import pallas as pl
from jax.experimental.pallas import tpu as pltpu

# ----------------------- small synthetic Qwen2 config -----------------------
VOCAB = 128
HIDDEN = 32
NUM_HEADS = 2
NUM_KV_HEADS = 2
GQA_REP = NUM_HEADS // NUM_KV_HEADS
HEAD_DIM = HIDDEN // NUM_HEADS            # 16
ROTARY_DIM = HEAD_DIM                     # full-dim rotary (is_neox_style=True)
HALF_ROT = ROTARY_DIM // 2                # 8
INTERMEDIATE = 64
NUM_LAYERS = 2
SEQ = 8
ROPE_THETA = 1_000_000.0
RMS_EPS = 1e-6
ATTN_SCALE = 1.0 / math.sqrt(HEAD_DIM)
MATMUL_DTYPE = jnp.bfloat16               # MXU operand dtype; f32 accumulate

Q_OUT = NUM_HEADS * HEAD_DIM              # 32
KV_OUT = NUM_KV_HEADS * HEAD_DIM          # 32
QKV_OUT = Q_OUT + 2 * KV_OUT              # 96 (fused qkv_proj output width)


# --------------------------- fused whole-model kernel ------------------------
def fused_model_kernel(hid_ref, cosf_ref, sinn_ref,
                       ln1_ref, wqkv_ref, bqkv_ref, wo_ref, ln2_ref,
                       wgu_ref, wd_ref, normw_ref, out_ref):
    T = hid_ref.shape[0]

    # ---- loop-invariant values (hoisted out of the layer loop) ----
    cosf = cosf_ref[...][None]                       # (1, T, HEAD_DIM)
    sinn = sinn_ref[...][None]                       # (1, T, HEAD_DIM), signed
    row = lax.broadcasted_iota(jnp.int32, (T, T), 0)
    col = lax.broadcasted_iota(jnp.int32, (T, T), 1)
    causal = (row >= col)[None]                      # (1, T, T)

    def rms_norm(x, w):
        inv = lax.rsqrt(jnp.mean(x * x, axis=-1, keepdims=True) + RMS_EPS)
        return (x * inv) * w

    def split_heads(x2d, n):
        # (T, n*D) -> (n, T, D): static lane slices stacked on a new major axis
        return jnp.stack(
            [x2d[:, i * HEAD_DIM:(i + 1) * HEAD_DIM] for i in range(n)], axis=0)

    def rope(x):
        # neox rotary at full HEAD_DIM width:
        #   rot(x) = x * [cos,cos] + rotate_half(x) * [sin,sin]
        # with rotate_half's sign folded into the precomputed sinn table.
        xr = jnp.concatenate([x[..., HALF_ROT:], x[..., :HALF_ROT]], axis=-1)
        return x * cosf + xr * sinn

    h = hid_ref[...]                                 # (T, HIDDEN) f32
    res = jnp.zeros_like(h)

    # Layers fully unrolled inside a single kernel invocation (toy sizes: all
    # layer weights are already VMEM resident; a per-layer grid step would
    # only add pipeline overhead).  Static layer indices -> zero-cost views.
    for l in range(NUM_LAYERS):
        # --- input_layernorm (fused residual add + RMSNorm, f32 stats) ---
        x = h + res
        res1 = x
        xn = rms_norm(x, ln1_ref[l])

        # --- fused QKV projection: one (T,HIDDEN)@(HIDDEN,QKV_OUT) matmul ---
        qkv = jnp.dot(xn.astype(MATMUL_DTYPE), wqkv_ref[l],
                      preferred_element_type=jnp.float32) + bqkv_ref[l]
        q3 = split_heads(qkv[:, :Q_OUT], NUM_HEADS)              # (H,  T, D)
        k3 = split_heads(qkv[:, Q_OUT:Q_OUT + KV_OUT], NUM_KV_HEADS)
        v3 = split_heads(qkv[:, Q_OUT + KV_OUT:], NUM_KV_HEADS)  # (KV, T, D)

        # --- neox RoPE at full HEAD_DIM width (f32) ---
        q3 = rope(q3)
        k3 = rope(k3)
        if GQA_REP > 1:
            # GQA: expand KV-head *activations* across the query-head group
            # (weights are never replicated).  No-op for this config.
            k3 = jnp.repeat(k3, GQA_REP, axis=0)
            v3 = jnp.repeat(v3, GQA_REP, axis=0)

        # --- ONE score matmul per layer (K=HEAD_DIM), batched over heads ---
        s = lax.dot_general(q3.astype(MATMUL_DTYPE), k3.astype(MATMUL_DTYPE),
                            (((2,), (2,)), ((0,), (0,))),
                            preferred_element_type=jnp.float32) * ATTN_SCALE
        s = jnp.where(causal, s, jnp.float32(-1e30))
        s = s - jnp.max(s, axis=-1, keepdims=True)
        p = jnp.exp(s)
        p = p * pl.reciprocal(jnp.sum(p, axis=-1, keepdims=True), approx=True)

        o = lax.dot_general(p.astype(MATMUL_DTYPE), v3.astype(MATMUL_DTYPE),
                            (((2,), (1,)), ((0,), (0,))),
                            preferred_element_type=jnp.float32)  # (H, T, D)

        # --- o_proj with the head reduction inside the MXU contraction ---
        o2d = jnp.concatenate([o[i] for i in range(NUM_HEADS)], axis=-1)
        attn = jnp.dot(o2d.astype(MATMUL_DTYPE), wo_ref[l],
                       preferred_element_type=jnp.float32)       # (T, HIDDEN)

        # --- post_attention_layernorm (fused residual add + RMSNorm) ---
        x2 = attn + res1
        res = x2
        xn2 = rms_norm(x2, ln2_ref[l])

        # --- SiLU-gated MLP (lane-dense fused gate_up matmul) ---
        gu = jnp.dot(xn2.astype(MATMUL_DTYPE), wgu_ref[l],
                     preferred_element_type=jnp.float32)         # (T, 2*INT)
        gate = gu[:, :INTERMEDIATE]
        up = gu[:, INTERMEDIATE:]
        act = gate * lax.logistic(gate) * up
        h = jnp.dot(act.astype(MATMUL_DTYPE), wd_ref[l],
                    preferred_element_type=jnp.float32)          # (T, HIDDEN)

    # --- final RMSNorm ---
    xf = h + res
    out_ref[...] = rms_norm(xf, normw_ref[...])


# ------------------------------ cost estimate --------------------------------
def _cost_estimate(kernel_args, T):
    per_layer_flops = (
        2 * T * HIDDEN * QKV_OUT                          # fused qkv proj
        + 2 * NUM_HEADS * T * T * HEAD_DIM                # attention scores
        + 2 * NUM_HEADS * T * T * HEAD_DIM                # p @ v
        + 2 * T * Q_OUT * HIDDEN                          # o_proj (+ head sum)
        + 2 * T * HIDDEN * 2 * INTERMEDIATE               # gate_up
        + 2 * T * INTERMEDIATE * HIDDEN                   # down
    )
    per_layer_trans = (NUM_HEADS * T * T                  # exp
                       + T * INTERMEDIATE                 # logistic
                       + 2 * T                            # rsqrt
                       + NUM_HEADS * T)                   # reciprocal
    bytes_accessed = sum(int(a.size) * a.dtype.itemsize for a in kernel_args)
    bytes_accessed += T * HIDDEN * 4                      # output
    return pl.CostEstimate(flops=int(NUM_LAYERS * per_layer_flops),
                           transcendentals=int(NUM_LAYERS * per_layer_trans + T),
                           bytes_accessed=int(bytes_accessed))


# ------------------------------ model forward --------------------------------
def qwen2_model_forward(params, input_ids, positions):
    T = int(input_ids.shape[0])

    # Embedding lookup is a gather (glue) in plain JAX.
    hidden0 = jnp.take(params["embed"], input_ids, axis=0)       # (T, HIDDEN)

    # Patched rotary_emb: cos/sin from positions, pre-expanded to lane-dense
    # (T, HEAD_DIM) tables with the rotate-half sign folded into sin.
    # Note: positions cast to f32 are exact only up to 2^24.
    inv_freq = 1.0 / (ROPE_THETA ** (
        jnp.arange(0, ROTARY_DIM, 2, dtype=jnp.float32) / ROTARY_DIM))
    freqs = positions.astype(jnp.float32)[:, None] * inv_freq[None, :]
    cos = jnp.cos(freqs)                                          # (T, HALF_ROT)
    sin = jnp.sin(freqs)
    cosf = jnp.concatenate([cos, cos], axis=-1)                   # (T, HEAD_DIM)
    sinn = jnp.concatenate([-sin, sin], axis=-1)                  # sign-folded

    st = params["stacked"]
    kernel_args = (hidden0, cosf, sinn,
                   st["ln1"], st["wqkv"], st["bqkv"], st["wo"], st["ln2"],
                   st["wgu"], st["wd"], params["norm_w"])

    vmem_spec = pl.BlockSpec(memory_space=pltpu.MemorySpace.VMEM)
    return pl.pallas_call(
        fused_model_kernel,
        out_shape=jax.ShapeDtypeStruct((T, HIDDEN), jnp.float32),
        in_specs=[vmem_spec] * len(kernel_args),   # whole arrays VMEM-resident
        out_specs=vmem_spec,
        compiler_params=pltpu.CompilerParams(
            vmem_limit_bytes=32 * 1024 * 1024,     # headroom on v7x (64 MiB)
        ),
        cost_estimate=_cost_estimate(kernel_args, T),
    )(*kernel_args)


# ------------------------------ params ---------------------------------------
def init_params(key):
    k_embed, k_layers = jax.random.split(key)
    embed = jax.random.normal(k_embed, (VOCAB, HIDDEN), jnp.float32) * 0.02

    flat_layers = []
    stacked = dict(ln1=[], wqkv=[], bqkv=[], wo=[], ln2=[], wgu=[], wd=[])

    for i in range(NUM_LAYERS):
        k = jax.random.split(jax.random.fold_in(k_layers, i), 9)
        lp = dict(
            ln1=jnp.ones((1, HIDDEN), jnp.float32),
            wq=jax.random.normal(k[0], (HIDDEN, Q_OUT), jnp.float32) * 0.05,
            bq=jax.random.normal(k[1], (Q_OUT,), jnp.float32) * 0.02,
            wk=jax.random.normal(k[2], (HIDDEN, KV_OUT), jnp.float32) * 0.05,
            bk=jax.random.normal(k[3], (KV_OUT,), jnp.float32) * 0.02,
            wv=jax.random.normal(k[4], (HIDDEN, KV_OUT), jnp.float32) * 0.05,
            bv=jax.random.normal(k[5], (KV_OUT,), jnp.float32) * 0.02,
            wo=jax.random.normal(k[6], (Q_OUT, HIDDEN), jnp.float32) * 0.05,
            ln2=jnp.ones((1, HIDDEN), jnp.float32),
            wgu=jax.random.normal(k[7], (HIDDEN, 2 * INTERMEDIATE), jnp.float32) * 0.05,
            wd=jax.random.normal(k[8], (INTERMEDIATE, HIDDEN), jnp.float32) * 0.05,
        )
        flat_layers.append(lp)

        # Layer-stacked, fused, lane-dense kernel weights (mirrors vLLM's
        # stacked qkv_proj / gate_up_proj parameter layout).  KV weights are
        # stored once per KV head (no per-query-head replication).
        stacked["ln1"].append(lp["ln1"])
        stacked["wqkv"].append(jnp.concatenate(
            [lp["wq"], lp["wk"], lp["wv"]], axis=1).astype(MATMUL_DTYPE))
        stacked["bqkv"].append(jnp.concatenate(
            [lp["bq"], lp["bk"], lp["bv"]]).reshape(1, QKV_OUT))
        stacked["wo"].append(lp["wo"].astype(MATMUL_DTYPE))
        stacked["ln2"].append(lp["ln2"])
        stacked["wgu"].append(lp["wgu"].astype(MATMUL_DTYPE))
        stacked["wd"].append(lp["wd"].astype(MATMUL_DTYPE))

    stacked = {n: jnp.stack(v, axis=0) for n, v in stacked.items()}
    norm_w = jnp.ones((1, HIDDEN), jnp.float32)
    return dict(embed=embed, flat_layers=flat_layers, stacked=stacked,
                norm_w=norm_w)


# ---------------------------- pure-JAX reference ------------------------------
def reference_forward(params, input_ids, positions):
    h = jnp.take(params["embed"], input_ids, axis=0)
    inv_freq = 1.0 / (ROPE_THETA ** (
        jnp.arange(0, ROTARY_DIM, 2, dtype=jnp.float32) / ROTARY_DIM))
    freqs = positions.astype(jnp.float32)[:, None] * inv_freq[None, :]
    cos, sin = jnp.cos(freqs), jnp.sin(freqs)
    T = h.shape[0]
    res = jnp.zeros_like(h)
    causal = jnp.tril(jnp.ones((T, T), bool))

    def rot(t):
        a, b = t[:, :HALF_ROT], t[:, HALF_ROT:]
        return jnp.concatenate([a * cos - b * sin, b * cos + a * sin], axis=-1)

    for lp in params["flat_layers"]:
        x = h + res
        res1 = x
        xn = x * lax.rsqrt(jnp.mean(x * x, -1, keepdims=True) + RMS_EPS) * lp["ln1"]
        q = xn @ lp["wq"] + lp["bq"]
        k = xn @ lp["wk"] + lp["bk"]
        v = xn @ lp["wv"] + lp["bv"]
        heads = []
        for hh in range(NUM_HEADS):
            kvh = hh // GQA_REP
            qh = q[:, hh * HEAD_DIM:(hh + 1) * HEAD_DIM]
            kh = k[:, kvh * HEAD_DIM:(kvh + 1) * HEAD_DIM]
            vh = v[:, kvh * HEAD_DIM:(kvh + 1) * HEAD_DIM]
            s = (rot(qh) @ rot(kh).T) * ATTN_SCALE
            s = jnp.where(causal, s, -1e30)
            heads.append(jax.nn.softmax(s, axis=-1) @ vh)
        attn = jnp.concatenate(heads, -1) @ lp["wo"]
        x2 = attn + res1
        res2 = x2
        xn2 = x2 * lax.rsqrt(jnp.mean(x2 * x2, -1, keepdims=True) + RMS_EPS) * lp["ln2"]
        gu = xn2 @ lp["wgu"]
        g, u = gu[:, :INTERMEDIATE], gu[:, INTERMEDIATE:]
        h = (g * jax.nn.sigmoid(g) * u) @ lp["wd"]
        res = res2
    xf = h + res
    return xf * lax.rsqrt(jnp.mean(xf * xf, -1, keepdims=True) + RMS_EPS) * params["norm_w"]


if __name__ == "__main__":
    key = jax.random.PRNGKey(0)
    k_param, k_ids = jax.random.split(key)
    params = init_params(k_param)

    input_ids = jax.random.randint(k_ids, (SEQ,), 0, VOCAB, dtype=jnp.int32)
    positions = jnp.arange(SEQ, dtype=jnp.int32)

    out = qwen2_model_forward(params, input_ids, positions)
    out = jax.block_until_ready(out)

    assert out.shape == (SEQ, HIDDEN)
    assert bool(jnp.all(jnp.isfinite(out)))

    ref = reference_forward(params, input_ids, positions)
    max_err = float(jnp.max(jnp.abs(out - ref)))
    # bf16 MXU operands (f32 master weights in the reference) + approx recip.
    tol = 5e-2 + 5e-2 * float(jnp.max(jnp.abs(ref)))
    assert max_err < tol, f"max abs err {max_err} vs tol {tol}"
    print("KERNEL_OK")
</pallas_src>

<mosaic_0001>
module attributes {stable_mosaic.version = 11 : i64} {
  func.func @fused_model_kernel(%arg0: memref<8x32xf32, #tpu.memory_space<vmem>>, %arg1: memref<8x16xf32, #tpu.memory_space<vmem>>, %arg2: memref<8x16xf32, #tpu.memory_space<vmem>>, %arg3: memref<2x1x32xf32, #tpu.memory_space<vmem>>, %arg4: memref<2x32x96xbf16, #tpu.memory_space<vmem>>, %arg5: memref<2x1x96xf32, #tpu.memory_space<vmem>>, %arg6: memref<2x32x32xbf16, #tpu.memory_space<vmem>>, %arg7: memref<2x1x32xf32, #tpu.memory_space<vmem>>, %arg8: memref<2x32x128xbf16, #tpu.memory_space<vmem>>, %arg9: memref<2x64x32xbf16, #tpu.memory_space<vmem>>, %arg10: memref<1x32xf32, #tpu.memory_space<vmem>>, %arg11: memref<8x32xf32, #tpu.memory_space<vmem>>) attributes {dimension_semantics = [], scalar_prefetch = 0 : i64, scratch_operands = 0 : i64, tpu.core_type = #tpu.core_type<tc>} {
    %c0 = arith.constant 0 : index
    %c0_0 = arith.constant 0 : index
    %0 = vector.load %arg1[%c0, %c0_0] : memref<8x16xf32, #tpu.memory_space<vmem>>, vector<8x16xf32>
    %1 = vector.shape_cast %0 : vector<8x16xf32> to vector<1x8x16xf32>
    %c0_1 = arith.constant 0 : index
    %c0_2 = arith.constant 0 : index
    %2 = vector.load %arg2[%c0_1, %c0_2] : memref<8x16xf32, #tpu.memory_space<vmem>>, vector<8x16xf32>
    %3 = vector.shape_cast %2 : vector<8x16xf32> to vector<1x8x16xf32>
    %4 = tpu.iota {dimensions = array<i32: 0>} : vector<8x8xi32>
    %5 = tpu.iota {dimensions = array<i32: 1>} : vector<8x8xi32>
    %6 = arith.cmpi sge, %4, %5 : vector<8x8xi32>
    %7 = vector.shape_cast %6 : vector<8x8xi1> to vector<1x8x8xi1>
    %c0_3 = arith.constant 0 : index
    %c0_4 = arith.constant 0 : index
    %8 = vector.load %arg0[%c0_3, %c0_4] : memref<8x32xf32, #tpu.memory_space<vmem>>, vector<8x32xf32>
    %cst = arith.constant 0.000000e+00 : f32
    %9 = vector.broadcast %cst : f32 to vector<8x32xf32>
    %10 = arith.addf %8, %9 : vector<8x32xf32>
    %c0_5 = arith.constant 0 : index
    %c0_6 = arith.constant 0 : index
    %c0_7 = arith.constant 0 : index
    %11 = vector.load %arg3[%c0_5, %c0_6, %c0_7] : memref<2x1x32xf32, #tpu.memory_space<vmem>>, vector<1x1x32xf32>
    %12 = vector.shape_cast %11 : vector<1x1x32xf32> to vector<1x32xf32>
    %13 = arith.mulf %10, %10 : vector<8x32xf32>
    %cst_8 = arith.constant dense<0.000000e+00> : vector<8xf32>
    %14 = vector.multi_reduction <add>, %13, %cst_8 [1] : vector<8x32xf32> to vector<8xf32>
    %15 = vector.shape_cast %14 : vector<8xf32> to vector<8x1xf32>
    %cst_9 = arith.constant 3.200000e+01 : f32
    %16 = vector.broadcast %cst_9 : f32 to vector<8x1xf32>
    %17 = arith.divf %15, %16 : vector<8x1xf32>
    %cst_10 = arith.constant 9.99999997E-7 : f32
    %18 = vector.broadcast %cst_10 : f32 to vector<8x1xf32>
    %19 = arith.addf %17, %18 : vector<8x1xf32>
    %20 = math.rsqrt %19 : vector<8x1xf32>
    %21 = vector.broadcast %20 : vector<8x1xf32> to vector<8x32xf32>
    %22 = arith.mulf %10, %21 : vector<8x32xf32>
    %23 = vector.broadcast %12 : vector<1x32xf32> to vector<8x32xf32>
    %24 = arith.mulf %22, %23 : vector<8x32xf32>
    %25 = arith.truncf %24 : vector<8x32xf32> to vector<8x32xbf16>
    %c0_11 = arith.constant 0 : index
    %c0_12 = arith.constant 0 : index
    %c0_13 = arith.constant 0 : index
    %26 = vector.load %arg4[%c0_11, %c0_12, %c0_13] : memref<2x32x96xbf16, #tpu.memory_space<vmem>>, vector<1x32x96xbf16>
    %27 = vector.shape_cast %26 : vector<1x32x96xbf16> to vector<32x96xbf16>
    %cst_14 = arith.constant dense<0.000000e+00> : vector<8x96xf32>
    %28 = tpu.matmul %25, %27, %cst_14 {dimension_numbers = #tpu.dot_dimension_numbers<[1], [0], [0], [1], [0, 0, 1, 1], [], []>} : vector<8x32xbf16>, vector<32x96xbf16>, vector<8x96xf32> -> vector<8x96xf32>
    %c0_15 = arith.constant 0 : index
    %c0_16 = arith.constant 0 : index
    %c0_17 = arith.constant 0 : index
    %29 = vector.load %arg5[%c0_15, %c0_16, %c0_17] : memref<2x1x96xf32, #tpu.memory_space<vmem>>, vector<1x1x96xf32>
    %30 = vector.shape_cast %29 : vector<1x1x96xf32> to vector<1x96xf32>
    %31 = vector.broadcast %30 : vector<1x96xf32> to vector<8x96xf32>
    %32 = arith.addf %28, %31 : vector<8x96xf32>
    %33 = vector.extract_strided_slice %32 {offsets = [0, 0], sizes = [8, 32], strides = [1, 1]} : vector<8x96xf32> to vector<8x32xf32>
    %34 = vector.extract_strided_slice %33 {offsets = [0, 0], sizes = [8, 16], strides = [1, 1]} : vector<8x32xf32> to vector<8x16xf32>
    %35 = vector.extract_strided_slice %33 {offsets = [0, 16], sizes = [8, 16], strides = [1, 1]} : vector<8x32xf32> to vector<8x16xf32>
    %36 = vector.shape_cast %34 : vector<8x16xf32> to vector<1x8x16xf32>
    %37 = vector.shape_cast %35 : vector<8x16xf32> to vector<1x8x16xf32>
    %38 = tpu.concatenate %36, %37 in 0 : vector<1x8x16xf32>, vector<1x8x16xf32> -> vector<2x8x16xf32>
    %39 = vector.extract_strided_slice %32 {offsets = [0, 32], sizes = [8, 32], strides = [1, 1]} : vector<8x96xf32> to vector<8x32xf32>
    %40 = vector.extract_strided_slice %39 {offsets = [0, 0], sizes = [8, 16], strides = [1, 1]} : vector<8x32xf32> to vector<8x16xf32>
    %41 = vector.extract_strided_slice %39 {offsets = [0, 16], sizes = [8, 16], strides = [1, 1]} : vector<8x32xf32> to vector<8x16xf32>
    %42 = vector.shape_cast %40 : vector<8x16xf32> to vector<1x8x16xf32>
    %43 = vector.shape_cast %41 : vector<8x16xf32> to vector<1x8x16xf32>
    %44 = tpu.concatenate %42, %43 in 0 : vector<1x8x16xf32>, vector<1x8x16xf32> -> vector<2x8x16xf32>
    %45 = vector.extract_strided_slice %32 {offsets = [0, 64], sizes = [8, 32], strides = [1, 1]} : vector<8x96xf32> to vector<8x32xf32>
    %46 = vector.extract_strided_slice %45 {offsets = [0, 0], sizes = [8, 16], strides = [1, 1]} : vector<8x32xf32> to vector<8x16xf32>
    %47 = vector.extract_strided_slice %45 {offsets = [0, 16], sizes = [8, 16], strides = [1, 1]} : vector<8x32xf32> to vector<8x16xf32>
    %48 = vector.shape_cast %46 : vector<8x16xf32> to vector<1x8x16xf32>
    %49 = vector.shape_cast %47 : vector<8x16xf32> to vector<1x8x16xf32>
    %50 = tpu.concatenate %48, %49 in 0 : vector<1x8x16xf32>, vector<1x8x16xf32> -> vector<2x8x16xf32>
    %51 = vector.extract_strided_slice %38 {offsets = [0, 0, 8], sizes = [2, 8, 8], strides = [1, 1, 1]} : vector<2x8x16xf32> to vector<2x8x8xf32>
    %52 = vector.extract_strided_slice %38 {offsets = [0, 0, 0], sizes = [2, 8, 8], strides = [1, 1, 1]} : vector<2x8x16xf32> to vector<2x8x8xf32>
    %53 = tpu.concatenate %51, %52 in 2 : vector<2x8x8xf32>, vector<2x8x8xf32> -> vector<2x8x16xf32>
    %54 = vector.broadcast %1 : vector<1x8x16xf32> to vector<2x8x16xf32>
    %55 = arith.mulf %38, %54 : vector<2x8x16xf32>
    %56 = vector.broadcast %3 : vector<1x8x16xf32> to vector<2x8x16xf32>
    %57 = arith.mulf %53, %56 : vector<2x8x16xf32>
    %58 = arith.addf %55, %57 : vector<2x8x16xf32>
    %59 = vector.extract_strided_slice %44 {offsets = [0, 0, 8], sizes = [2, 8, 8], strides = [1, 1, 1]} : vector<2x8x16xf32> to vector<2x8x8xf32>
    %60 = vector.extract_strided_slice %44 {offsets = [0, 0, 0], sizes = [2, 8, 8], strides = [1, 1, 1]} : vector<2x8x16xf32> to vector<2x8x8xf32>
    %61 = tpu.concatenate %59, %60 in 2 : vector<2x8x8xf32>, vector<2x8x8xf32> -> vector<2x8x16xf32>
    %62 = vector.broadcast %1 : vector<1x8x16xf32> to vector<2x8x16xf32>
    %63 = arith.mulf %44, %62 : vector<2x8x16xf32>
    %64 = vector.broadcast %3 : vector<1x8x16xf32> to vector<2x8x16xf32>
    %65 = arith.mulf %61, %64 : vector<2x8x16xf32>
    %66 = arith.addf %63, %65 : vector<2x8x16xf32>
    %67 = arith.truncf %58 : vector<2x8x16xf32> to vector<2x8x16xbf16>
    %68 = arith.truncf %66 : vector<2x8x16xf32> to vector<2x8x16xbf16>
    %cst_18 = arith.constant dense<0.000000e+00> : vector<2x8x8xf32>
    %69 = tpu.matmul %67, %68, %cst_18 {dimension_numbers = #tpu.dot_dimension_numbers<[2], [2], [1], [1], [0, 0, 0, 1, 1, 1], [0], [0]>} : vector<2x8x16xbf16>, vector<2x8x16xbf16>, vector<2x8x8xf32> -> vector<2x8x8xf32>
    %cst_19 = arith.constant 2.500000e-01 : f32
    %70 = vector.broadcast %cst_19 : f32 to vector<2x8x8xf32>
    %71 = arith.mulf %69, %70 : vector<2x8x8xf32>
    %cst_20 = arith.constant -1.000000e+30 : f32
    %72 = vector.shape_cast %7 : vector<1x8x8xi1> to vector<1x8x8xi1>
    %73 = vector.broadcast %72 : vector<1x8x8xi1> to vector<2x8x8xi1>
    %74 = vector.broadcast %cst_20 : f32 to vector<2x8x8xf32>
    %75 = arith.select %73, %71, %74 : vector<2x8x8xi1>, vector<2x8x8xf32>
    %cst_21 = arith.constant dense<0xFF800000> : vector<2x8xf32>
    %76 = vector.multi_reduction <maximumf>, %75, %cst_21 [2] : vector<2x8x8xf32> to vector<2x8xf32>
    %77 = vector.shape_cast %76 : vector<2x8xf32> to vector<2x8x1xf32>
    %78 = vector.broadcast %77 : vector<2x8x1xf32> to vector<2x8x8xf32>
    %79 = arith.subf %75, %78 : vector<2x8x8xf32>
    %80 = math.exp %79 : vector<2x8x8xf32>
    %cst_22 = arith.constant dense<0.000000e+00> : vector<2x8xf32>
    %81 = vector.multi_reduction <add>, %80, %cst_22 [2] : vector<2x8x8xf32> to vector<2x8xf32>
    %82 = vector.shape_cast %81 : vector<2x8xf32> to vector<2x8x1xf32>
    %83 = tpu.reciprocal %82 {approx = true} : vector<2x8x1xf32> -> vector<2x8x1xf32>
    %84 = vector.broadcast %83 : vector<2x8x1xf32> to vector<2x8x8xf32>
    %85 = arith.mulf %80, %84 : vector<2x8x8xf32>
    %86 = arith.truncf %85 : vector<2x8x8xf32> to vector<2x8x8xbf16>
    %87 = arith.truncf %50 : vector<2x8x16xf32> to vector<2x8x16xbf16>
    %cst_23 = arith.constant dense<0.000000e+00> : vector<2x8x16xf32>
    %88 = tpu.matmul %86, %87, %cst_23 {dimension_numbers = #tpu.dot_dimension_numbers<[2], [1], [1], [2], [0, 0, 0, 1, 1, 2], [0], [0]>} : vector<2x8x8xbf16>, vector<2x8x16xbf16>, vector<2x8x16xf32> -> vector<2x8x16xf32>
    %89 = vector.extract_strided_slice %88 {offsets = [0, 0, 0], sizes = [1, 8, 16], strides = [1, 1, 1]} : vector<2x8x16xf32> to vector<1x8x16xf32>
    %90 = vector.shape_cast %89 : vector<1x8x16xf32> to vector<8x16xf32>
    %91 = vector.extract_strided_slice %88 {offsets = [1, 0, 0], sizes = [1, 8, 16], strides = [1, 1, 1]} : vector<2x8x16xf32> to vector<1x8x16xf32>
    %92 = vector.shape_cast %91 : vector<1x8x16xf32> to vector<8x16xf32>
    %93 = tpu.concatenate %90, %92 in 1 : vector<8x16xf32>, vector<8x16xf32> -> vector<8x32xf32>
    %94 = arith.truncf %93 : vector<8x32xf32> to vector<8x32xbf16>
    %c0_24 = arith.constant 0 : index
    %c0_25 = arith.constant 0 : index
    %c0_26 = arith.constant 0 : index
    %95 = vector.load %arg6[%c0_24, %c0_25, %c0_26] : memref<2x32x32xbf16, #tpu.memory_space<vmem>>, vector<1x32x32xbf16>
    %96 = vector.shape_cast %95 : vector<1x32x32xbf16> to vector<32x32xbf16>
    %cst_27 = arith.constant dense<0.000000e+00> : vector<8x32xf32>
    %97 = tpu.matmul %94, %96, %cst_27 {dimension_numbers = #tpu.dot_dimension_numbers<[1], [0], [0], [1], [0, 0, 1, 1], [], []>} : vector<8x32xbf16>, vector<32x32xbf16>, vector<8x32xf32> -> vector<8x32xf32>
    %98 = arith.addf %97, %10 : vector<8x32xf32>
    %c0_28 = arith.constant 0 : index
    %c0_29 = arith.constant 0 : index
    %c0_30 = arith.constant 0 : index
    %99 = vector.load %arg7[%c0_28, %c0_29, %c0_30] : memref<2x1x32xf32, #tpu.memory_space<vmem>>, vector<1x1x32xf32>
    %100 = vector.shape_cast %99 : vector<1x1x32xf32> to vector<1x32xf32>
    %101 = arith.mulf %98, %98 : vector<8x32xf32>
    %cst_31 = arith.constant dense<0.000000e+00> : vector<8xf32>
    %102 = vector.multi_reduction <add>, %101, %cst_31 [1] : vector<8x32xf32> to vector<8xf32>
    %103 = vector.shape_cast %102 : vector<8xf32> to vector<8x1xf32>
    %cst_32 = arith.constant 3.200000e+01 : f32
    %104 = vector.broadcast %cst_32 : f32 to vector<8x1xf32>
    %105 = arith.divf %103, %104 : vector<8x1xf32>
    %cst_33 = arith.constant 9.99999997E-7 : f32
    %106 = vector.broadcast %cst_33 : f32 to vector<8x1xf32>
    %107 = arith.addf %105, %106 : vector<8x1xf32>
    %108 = math.rsqrt %107 : vector<8x1xf32>
    %109 = vector.broadcast %108 : vector<8x1xf32> to vector<8x32xf32>
    %110 = arith.mulf %98, %109 : vector<8x32xf32>
    %111 = vector.broadcast %100 : vector<1x32xf32> to vector<8x32xf32>
    %112 = arith.mulf %110, %111 : vector<8x32xf32>
    %113 = arith.truncf %112 : vector<8x32xf32> to vector<8x32xbf16>
    %c0_34 = arith.constant 0 : index
    %c0_35 = arith.constant 0 : index
    %c0_36 = arith.constant 0 : index
    %114 = vector.load %arg8[%c0_34, %c0_35, %c0_36] : memref<2x32x128xbf16, #tpu.memory_space<vmem>>, vector<1x32x128xbf16>
    %115 = vector.shape_cast %114 : vector<1x32x128xbf16> to vector<32x128xbf16>
    %cst_37 = arith.constant dense<0.000000e+00> : vector<8x128xf32>
    %116 = tpu.matmul %113, %115, %cst_37 {dimension_numbers = #tpu.dot_dimension_numbers<[1], [0], [0], [1], [0, 0, 1, 1], [], []>} : vector<8x32xbf16>, vector<32x128xbf16>, vector<8x128xf32> -> vector<8x128xf32>
    %117 = vector.extract_strided_slice %116 {offsets = [0, 0], sizes = [8, 64], strides = [1, 1]} : vector<8x128xf32> to vector<8x64xf32>
    %118 = vector.extract_strided_slice %116 {offsets = [0, 64], sizes = [8, 64], strides = [1, 1]} : vector<8x128xf32> to vector<8x64xf32>
    %119 = arith.negf %117 : vector<8x64xf32>
    %120 = math.exp %119 : vector<8x64xf32>
    %cst_38 = arith.constant 1.000000e+00 : f32
    %121 = vector.broadcast %cst_38 : f32 to vector<8x64xf32>
    %122 = arith.addf %121, %120 : vector<8x64xf32>
    %123 = arith.divf %121, %122 : vector<8x64xf32>
    %124 = arith.mulf %117, %123 : vector<8x64xf32>
    %125 = arith.mulf %124, %118 : vector<8x64xf32>
    %126 = arith.truncf %125 : vector<8x64xf32> to vector<8x64xbf16>
    %c0_39 = arith.constant 0 : index
    %c0_40 = arith.constant 0 : index
    %c0_41 = arith.constant 0 : index
    %127 = vector.load %arg9[%c0_39, %c0_40, %c0_41] : memref<2x64x32xbf16, #tpu.memory_space<vmem>>, vector<1x64x32xbf16>
    %128 = vector.shape_cast %127 : vector<1x64x32xbf16> to vector<64x32xbf16>
    %cst_42 = arith.constant dense<0.000000e+00> : vector<8x32xf32>
    %129 = tpu.matmul %126, %128, %cst_42 {dimension_numbers = #tpu.dot_dimension_numbers<[1], [0], [0], [1], [0, 0, 1, 1], [], []>} : vector<8x64xbf16>, vector<64x32xbf16>, vector<8x32xf32> -> vector<8x32xf32>
    %130 = arith.addf %129, %98 : vector<8x32xf32>
    %c1 = arith.constant 1 : index
    %c0_43 = arith.constant 0 : index
    %c0_44 = arith.constant 0 : index
    %131 = vector.load %arg3[%c1, %c0_43, %c0_44] : memref<2x1x32xf32, #tpu.memory_space<vmem>>, vector<1x1x32xf32>
    %132 = vector.shape_cast %131 : vector<1x1x32xf32> to vector<1x32xf32>
    %133 = arith.mulf %130, %130 : vector<8x32xf32>
    %cst_45 = arith.constant dense<0.000000e+00> : vector<8xf32>
    %134 = vector.multi_reduction <add>, %133, %cst_45 [1] : vector<8x32xf32> to vector<8xf32>
    %135 = vector.shape_cast %134 : vector<8xf32> to vector<8x1xf32>
    %cst_46 = arith.constant 3.200000e+01 : f32
    %136 = vector.broadcast %cst_46 : f32 to vector<8x1xf32>
    %137 = arith.divf %135, %136 : vector<8x1xf32>
    %cst_47 = arith.constant 9.99999997E-7 : f32
    %138 = vector.broadcast %cst_47 : f32 to vector<8x1xf32>
    %139 = arith.addf %137, %138 : vector<8x1xf32>
    %140 = math.rsqrt %139 : vector<8x1xf32>
    %141 = vector.broadcast %140 : vector<8x1xf32> to vector<8x32xf32>
    %142 = arith.mulf %130, %141 : vector<8x32xf32>
    %143 = vector.broadcast %132 : vector<1x32xf32> to vector<8x32xf32>
    %144 = arith.mulf %142, %143 : vector<8x32xf32>
    %145 = arith.truncf %144 : vector<8x32xf32> to vector<8x32xbf16>
    %c1_48 = arith.constant 1 : index
    %c0_49 = arith.constant 0 : index
    %c0_50 = arith.constant 0 : index
    %146 = vector.load %arg4[%c1_48, %c0_49, %c0_50] : memref<2x32x96xbf16, #tpu.memory_space<vmem>>, vector<1x32x96xbf16>
    %147 = vector.shape_cast %146 : vector<1x32x96xbf16> to vector<32x96xbf16>
    %cst_51 = arith.constant dense<0.000000e+00> : vector<8x96xf32>
    %148 = tpu.matmul %145, %147, %cst_51 {dimension_numbers = #tpu.dot_dimension_numbers<[1], [0], [0], [1], [0, 0, 1, 1], [], []>} : vector<8x32xbf16>, vector<32x96xbf16>, vector<8x96xf32> -> vector<8x96xf32>
    %c1_52 = arith.constant 1 : index
    %c0_53 = arith.constant 0 : index
    %c0_54 = arith.constant 0 : index
    %149 = vector.load %arg5[%c1_52, %c0_53, %c0_54] : memref<2x1x96xf32, #tpu.memory_space<vmem>>, vector<1x1x96xf32>
    %150 = vector.shape_cast %149 : vector<1x1x96xf32> to vector<1x96xf32>
    %151 = vector.broadcast %150 : vector<1x96xf32> to vector<8x96xf32>
    %152 = arith.addf %148, %151 : vector<8x96xf32>
    %153 = vector.extract_strided_slice %152 {offsets = [0, 0], sizes = [8, 32], strides = [1, 1]} : vector<8x96xf32> to vector<8x32xf32>
    %154 = vector.extract_strided_slice %153 {offsets = [0, 0], sizes = [8, 16], strides = [1, 1]} : vector<8x32xf32> to vector<8x16xf32>
    %155 = vector.extract_strided_slice %153 {offsets = [0, 16], sizes = [8, 16], strides = [1, 1]} : vector<8x32xf32> to vector<8x16xf32>
    %156 = vector.shape_cast %154 : vector<8x16xf32> to vector<1x8x16xf32>
    %157 = vector.shape_cast %155 : vector<8x16xf32> to vector<1x8x16xf32>
    %158 = tpu.concatenate %156, %157 in 0 : vector<1x8x16xf32>, vector<1x8x16xf32> -> vector<2x8x16xf32>
    %159 = vector.extract_strided_slice %152 {offsets = [0, 32], sizes = [8, 32], strides = [1, 1]} : vector<8x96xf32> to vector<8x32xf32>
    %160 = vector.extract_strided_slice %159 {offsets = [0, 0], sizes = [8, 16], strides = [1, 1]} : vector<8x32xf32> to vector<8x16xf32>
    %161 = vector.extract_strided_slice %159 {offsets = [0, 16], sizes = [8, 16], strides = [1, 1]} : vector<8x32xf32> to vector<8x16xf32>
    %162 = vector.shape_cast %160 : vector<8x16xf32> to vector<1x8x16xf32>
    %163 = vector.shape_cast %161 : vector<8x16xf32> to vector<1x8x16xf32>
    %164 = tpu.concatenate %162, %163 in 0 : vector<1x8x16xf32>, vector<1x8x16xf32> -> vector<2x8x16xf32>
    %165 = vector.extract_strided_slice %152 {offsets = [0, 64], sizes = [8, 32], strides = [1, 1]} : vector<8x96xf32> to vector<8x32xf32>
    %166 = vector.extract_strided_slice %165 {offsets = [0, 0], sizes = [8, 16], strides = [1, 1]} : vector<8x32xf32> to vector<8x16xf32>
    %167 = vector.extract_strided_slice %165 {offsets = [0, 16], sizes = [8, 16], strides = [1, 1]} : vector<8x32xf32> to vector<8x16xf32>
    %168 = vector.shape_cast %166 : vector<8x16xf32> to vector<1x8x16xf32>
    %169 = vector.shape_cast %167 : vector<8x16xf32> to vector<1x8x16xf32>
    %170 = tpu.concatenate %168, %169 in 0 : vector<1x8x16xf32>, vector<1x8x16xf32> -> vector<2x8x16xf32>
    %171 = vector.extract_strided_slice %158 {offsets = [0, 0, 8], sizes = [2, 8, 8], strides = [1, 1, 1]} : vector<2x8x16xf32> to vector<2x8x8xf32>
    %172 = vector.extract_strided_slice %158 {offsets = [0, 0, 0], sizes = [2, 8, 8], strides = [1, 1, 1]} : vector<2x8x16xf32> to vector<2x8x8xf32>
    %173 = tpu.concatenate %171, %172 in 2 : vector<2x8x8xf32>, vector<2x8x8xf32> -> vector<2x8x16xf32>
    %174 = vector.broadcast %1 : vector<1x8x16xf32> to vector<2x8x16xf32>
    %175 = arith.mulf %158, %174 : vector<2x8x16xf32>
    %176 = vector.broadcast %3 : vector<1x8x16xf32> to vector<2x8x16xf32>
    %177 = arith.mulf %173, %176 : vector<2x8x16xf32>
    %178 = arith.addf %175, %177 : vector<2x8x16xf32>
    %179 = vector.extract_strided_slice %164 {offsets = [0, 0, 8], sizes = [2, 8, 8], strides = [1, 1, 1]} : vector<2x8x16xf32> to vector<2x8x8xf32>
    %180 = vector.extract_strided_slice %164 {offsets = [0, 0, 0], sizes = [2, 8, 8], strides = [1, 1, 1]} : vector<2x8x16xf32> to vector<2x8x8xf32>
    %181 = tpu.concatenate %179, %180 in 2 : vector<2x8x8xf32>, vector<2x8x8xf32> -> vector<2x8x16xf32>
    %182 = vector.broadcast %1 : vector<1x8x16xf32> to vector<2x8x16xf32>
    %183 = arith.mulf %164, %182 : vector<2x8x16xf32>
    %184 = vector.broadcast %3 : vector<1x8x16xf32> to vector<2x8x16xf32>
    %185 = arith.mulf %181, %184 : vector<2x8x16xf32>
    %186 = arith.addf %183, %185 : vector<2x8x16xf32>
    %187 = arith.truncf %178 : vector<2x8x16xf32> to vector<2x8x16xbf16>
    %188 = arith.truncf %186 : vector<2x8x16xf32> to vector<2x8x16xbf16>
    %cst_55 = arith.constant dense<0.000000e+00> : vector<2x8x8xf32>
    %189 = tpu.matmul %187, %188, %cst_55 {dimension_numbers = #tpu.dot_dimension_numbers<[2], [2], [1], [1], [0, 0, 0, 1, 1, 1], [0], [0]>} : vector<2x8x16xbf16>, vector<2x8x16xbf16>, vector<2x8x8xf32> -> vector<2x8x8xf32>
    %cst_56 = arith.constant 2.500000e-01 : f32
    %190 = vector.broadcast %cst_56 : f32 to vector<2x8x8xf32>
    %191 = arith.mulf %189, %190 : vector<2x8x8xf32>
    %cst_57 = arith.constant -1.000000e+30 : f32
    %192 = vector.shape_cast %7 : vector<1x8x8xi1> to vector<1x8x8xi1>
    %193 = vector.broadcast %192 : vector<1x8x8xi1> to vector<2x8x8xi1>
    %194 = vector.broadcast %cst_57 : f32 to vector<2x8x8xf32>
    %195 = arith.select %193, %191, %194 : vector<2x8x8xi1>, vector<2x8x8xf32>
    %cst_58 = arith.constant dense<0xFF800000> : vector<2x8xf32>
    %196 = vector.multi_reduction <maximumf>, %195, %cst_58 [2] : vector<2x8x8xf32> to vector<2x8xf32>
    %197 = vector.shape_cast %196 : vector<2x8xf32> to vector<2x8x1xf32>
    %198 = vector.broadcast %197 : vector<2x8x1xf32> to vector<2x8x8xf32>
    %199 = arith.subf %195, %198 : vector<2x8x8xf32>
    %200 = math.exp %199 : vector<2x8x8xf32>
    %cst_59 = arith.constant dense<0.000000e+00> : vector<2x8xf32>
    %201 = vector.multi_reduction <add>, %200, %cst_59 [2] : vector<2x8x8xf32> to vector<2x8xf32>
    %202 = vector.shape_cast %201 : vector<2x8xf32> to vector<2x8x1xf32>
    %203 = tpu.reciprocal %202 {approx = true} : vector<2x8x1xf32> -> vector<2x8x1xf32>
    %204 = vector.broadcast %203 : vector<2x8x1xf32> to vector<2x8x8xf32>
    %205 = arith.mulf %200, %204 : vector<2x8x8xf32>
    %206 = arith.truncf %205 : vector<2x8x8xf32> to vector<2x8x8xbf16>
    %207 = arith.truncf %170 : vector<2x8x16xf32> to vector<2x8x16xbf16>
    %cst_60 = arith.constant dense<0.000000e+00> : vector<2x8x16xf32>
    %208 = tpu.matmul %206, %207, %cst_60 {dimension_numbers = #tpu.dot_dimension_numbers<[2], [1], [1], [2], [0, 0, 0, 1, 1, 2], [0], [0]>} : vector<2x8x8xbf16>, vector<2x8x16xbf16>, vector<2x8x16xf32> -> vector<2x8x16xf32>
    %209 = vector.extract_strided_slice %208 {offsets = [0, 0, 0], sizes = [1, 8, 16], strides = [1, 1, 1]} : vector<2x8x16xf32> to vector<1x8x16xf32>
    %210 = vector.shape_cast %209 : vector<1x8x16xf32> to vector<8x16xf32>
    %211 = vector.extract_strided_slice %208 {offsets = [1, 0, 0], sizes = [1, 8, 16], strides = [1, 1, 1]} : vector<2x8x16xf32> to vector<1x8x16xf32>
    %212 = vector.shape_cast %211 : vector<1x8x16xf32> to vector<8x16xf32>
    %213 = tpu.concatenate %210, %212 in 1 : vector<8x16xf32>, vector<8x16xf32> -> vector<8x32xf32>
    %214 = arith.truncf %213 : vector<8x32xf32> to vector<8x32xbf16>
    %c1_61 = arith.constant 1 : index
    %c0_62 = arith.constant 0 : index
    %c0_63 = arith.constant 0 : index
    %215 = vector.load %arg6[%c1_61, %c0_62, %c0_63] : memref<2x32x32xbf16, #tpu.memory_space<vmem>>, vector<1x32x32xbf16>
    %216 = vector.shape_cast %215 : vector<1x32x32xbf16> to vector<32x32xbf16>
    %cst_64 = arith.constant dense<0.000000e+00> : vector<8x32xf32>
    %217 = tpu.matmul %214, %216, %cst_64 {dimension_numbers = #tpu.dot_dimension_numbers<[1], [0], [0], [1], [0, 0, 1, 1], [], []>} : vector<8x32xbf16>, vector<32x32xbf16>, vector<8x32xf32> -> vector<8x32xf32>
    %218 = arith.addf %217, %130 : vector<8x32xf32>
    %c1_65 = arith.constant 1 : index
    %c0_66 = arith.constant 0 : index
    %c0_67 = arith.constant 0 : index
    %219 = vector.load %arg7[%c1_65, %c0_66, %c0_67] : memref<2x1x32xf32, #tpu.memory_space<vmem>>, vector<1x1x32xf32>
    %220 = vector.shape_cast %219 : vector<1x1x32xf32> to vector<1x32xf32>
    %221 = arith.mulf %218, %218 : vector<8x32xf32>
    %cst_68 = arith.constant dense<0.000000e+00> : vector<8xf32>
    %222 = vector.multi_reduction <add>, %221, %cst_68 [1] : vector<8x32xf32> to vector<8xf32>
    %223 = vector.shape_cast %222 : vector<8xf32> to vector<8x1xf32>
    %cst_69 = arith.constant 3.200000e+01 : f32
    %224 = vector.broadcast %cst_69 : f32 to vector<8x1xf32>
    %225 = arith.divf %223, %224 : vector<8x1xf32>
    %cst_70 = arith.constant 9.99999997E-7 : f32
    %226 = vector.broadcast %cst_70 : f32 to vector<8x1xf32>
    %227 = arith.addf %225, %226 : vector<8x1xf32>
    %228 = math.rsqrt %227 : vector<8x1xf32>
    %229 = vector.broadcast %228 : vector<8x1xf32> to vector<8x32xf32>
    %230 = arith.mulf %218, %229 : vector<8x32xf32>
    %231 = vector.broadcast %220 : vector<1x32xf32> to vector<8x32xf32>
    %232 = arith.mulf %230, %231 : vector<8x32xf32>
    %233 = arith.truncf %232 : vector<8x32xf32> to vector<8x32xbf16>
    %c1_71 = arith.constant 1 : index
    %c0_72 = arith.constant 0 : index
    %c0_73 = arith.constant 0 : index
    %234 = vector.load %arg8[%c1_71, %c0_72, %c0_73] : memref<2x32x128xbf16, #tpu.memory_space<vmem>>, vector<1x32x128xbf16>
    %235 = vector.shape_cast %234 : vector<1x32x128xbf16> to vector<32x128xbf16>
    %cst_74 = arith.constant dense<0.000000e+00> : vector<8x128xf32>
    %236 = tpu.matmul %233, %235, %cst_74 {dimension_numbers = #tpu.dot_dimension_numbers<[1], [0], [0], [1], [0, 0, 1, 1], [], []>} : vector<8x32xbf16>, vector<32x128xbf16>, vector<8x128xf32> -> vector<8x128xf32>
    %237 = vector.extract_strided_slice %236 {offsets = [0, 0], sizes = [8, 64], strides = [1, 1]} : vector<8x128xf32> to vector<8x64xf32>
    %238 = vector.extract_strided_slice %236 {offsets = [0, 64], sizes = [8, 64], strides = [1, 1]} : vector<8x128xf32> to vector<8x64xf32>
    %239 = arith.negf %237 : vector<8x64xf32>
    %240 = math.exp %239 : vector<8x64xf32>
    %cst_75 = arith.constant 1.000000e+00 : f32
    %241 = vector.broadcast %cst_75 : f32 to vector<8x64xf32>
    %242 = arith.addf %241, %240 : vector<8x64xf32>
    %243 = arith.divf %241, %242 : vector<8x64xf32>
    %244 = arith.mulf %237, %243 : vector<8x64xf32>
    %245 = arith.mulf %244, %238 : vector<8x64xf32>
    %246 = arith.truncf %245 : vector<8x64xf32> to vector<8x64xbf16>
    %c1_76 = arith.constant 1 : index
    %c0_77 = arith.constant 0 : index
    %c0_78 = arith.constant 0 : index
    %247 = vector.load %arg9[%c1_76, %c0_77, %c0_78] : memref<2x64x32xbf16, #tpu.memory_space<vmem>>, vector<1x64x32xbf16>
    %248 = vector.shape_cast %247 : vector<1x64x32xbf16> to vector<64x32xbf16>
    %cst_79 = arith.constant dense<0.000000e+00> : vector<8x32xf32>
    %249 = tpu.matmul %246, %248, %cst_79 {dimension_numbers = #tpu.dot_dimension_numbers<[1], [0], [0], [1], [0, 0, 1, 1], [], []>} : vector<8x64xbf16>, vector<64x32xbf16>, vector<8x32xf32> -> vector<8x32xf32>
    %250 = arith.addf %249, %218 : vector<8x32xf32>
    %c0_80 = arith.constant 0 : index
    %c0_81 = arith.constant 0 : index
    %251 = vector.load %arg10[%c0_80, %c0_81] : memref<1x32xf32, #tpu.memory_space<vmem>>, vector<1x32xf32>
    %252 = arith.mulf %250, %250 : vector<8x32xf32>
    %cst_82 = arith.constant dense<0.000000e+00> : vector<8xf32>
    %253 = vector.multi_reduction <add>, %252, %cst_82 [1] : vector<8x32xf32> to vector<8xf32>
    %254 = vector.shape_cast %253 : vector<8xf32> to vector<8x1xf32>
    %cst_83 = arith.constant 3.200000e+01 : f32
    %255 = vector.broadcast %cst_83 : f32 to vector<8x1xf32>
    %256 = arith.divf %254, %255 : vector<8x1xf32>
    %cst_84 = arith.constant 9.99999997E-7 : f32
    %257 = vector.broadcast %cst_84 : f32 to vector<8x1xf32>
    %258 = arith.addf %256, %257 : vector<8x1xf32>
    %259 = math.rsqrt %258 : vector<8x1xf32>
    %260 = vector.broadcast %259 : vector<8x1xf32> to vector<8x32xf32>
    %261 = arith.mulf %250, %260 : vector<8x32xf32>
    %262 = vector.broadcast %251 : vector<1x32xf32> to vector<8x32xf32>
    %263 = arith.mulf %261, %262 : vector<8x32xf32>
    %c0_85 = arith.constant 0 : index
    %c0_86 = arith.constant 0 : index
    %264 = vector.load %arg11[%c0_85, %c0_86] : memref<8x32xf32, #tpu.memory_space<vmem>>, vector<8x32xf32>
    tpu.vector_store %arg11[%c0_85, %c0_86], %263 {strides = array<i32>} : memref<8x32xf32, #tpu.memory_space<vmem>>, vector<8x32xf32>,
    return
  }
}

</mosaic_0001>

<bundles_post_ra>
// kernel: tpu_custom_call.1
= control target key start
LH: loop header
LB: loop body
LE: loop exit
PB: predicated region body
PF: predicated region fallthrough
CT: control target
= control target key end

     0   :  { %16 = vsyncpa [#allocation3], 0  ;;  %s2117_s0 = inlined_call_operand.hbm [shape: f32[8,32], index: 0, kind: input, shape index: {}]   ;;  %s2118_s1 = inlined_call_operand.hbm [shape: f32[8,16], index: 1, kind: input, shape index: {}]   ;;  %s2119_s2 = inlined_call_operand.hbm [shape: f32[8,16], index: 2, kind: input, shape index: {}]   ;;  %s2120_s3 = inlined_call_operand.vmem [shape: f32[2,1,32], index: 3, kind: input, shape index: {}]   ;;  %s2121_s4 = inlined_call_operand.vmem [shape: bf16[2,32,96], index: 4, kind: input, shape index: {}]   ;;  %s2122_s5 = inlined_call_operand.vmem [shape: f32[2,1,96], index: 5, kind: input, shape index: {}]   ;;  %s2123_s6 = inlined_call_operand.vmem [shape: bf16[2,32,32], index: 6, kind: input, shape index: {}]   ;;  %s2124_s7 = inlined_call_operand.vmem [shape: f32[2,1,32], index: 7, kind: input, shape index: {}]   ;;  %s2125_s8 = inlined_call_operand.vmem [shape: bf16[2,32,128], index: 8, kind: input, shape index: {}]   ;;  %s2126_s9 = inlined_call_operand.vmem [shape: bf16[2,64,32], index: 9, kind: input, shape index: {}]   ;;  %s2127_s10 = inlined_call_operand.vmem [shape: f32[1,32], index: 10, kind: input, shape index: {}]   ;;  %s2128_s11 = inlined_call_operand.hbm [shape: f32[8,32], index: 11, kind: output, shape index: {}]  }
   0x1   :  { %17 = vsyncpa [#allocation6], 0 }
   0x2   :  { %18 = vsyncpa [#allocation4], 0  ;;  %s1711_s17 = smov [#allocation5]   ;;  %s1712_s19 = smov [#allocation2]  }
   0x3   :  { %s35_s18 = sshll.u32 %s1711_s17, 4  ;;  %s25_s20 = sshll.u32 %s1712_s19, 4  ;;  %s36_s18 = int_to_ptr.vmem [resolvable:$true] %s35_s18  ;;  %s26_s20 = int_to_ptr.vmem [resolvable:$true] %s25_s20 }
   0x4   :  { %s1633_s21 = scalar_lea.vmem %s36_s18, 128  ;;  %p1638_p1 = scmp.lt.s32.totalorder %s36_s18, %s36_s18 }
   0x5   :  { %p1634_p0 = scmp.ne.s32.totalorder %s36_s18, %s1633_s21  ;;  %p1639_p2 = scmp.lt.s32.totalorder %s1633_s21, %s1633_s21 }
   0x7   :  { %p1640_p3 = por %p1639_p2, %p1638_p1 }
   0x9   :  { %p1641_p4 = pnand %p1640_p3, %p1634_p0 }
   0xb   :  { %1644 = shalt.err (!%p1641_p4)
}
   0xc   :  { %38 = dma.hbm_to_vmem [thread:$0]  %s2118_s1, 128, %s36_s18, [#allocation6]  }
   0xd   :  { %s1653_s24 = scalar_lea.vmem %s26_s20, 128  ;;  %p1658_p6 = scmp.lt.s32.totalorder %s26_s20, %s26_s20 }
   0xe   :  { %p1654_p5 = scmp.ne.s32.totalorder %s26_s20, %s1653_s24  ;;  %p1659_p7 = scmp.lt.s32.totalorder %s1653_s24, %s1653_s24 }
  0x10   :  { %p1660_p8 = por %p1659_p7, %p1658_p6 }
  0x12   :  { %p1661_p9 = pnand %p1660_p8, %p1654_p5 }
  0x14   :  { %1664 = shalt.err (!%p1661_p9)
}
  0x15   :  { %28 = dma.hbm_to_vmem [thread:$0]  %s2117_s0, 128, %s26_s20, [#allocation3]  }
  0x16   :  { %s1713_s27 = smov [#allocation7]  }
  0x17   :  { %s45_s28 = sshll.u32 %s1713_s27, 4  ;;  %s46_s28 = int_to_ptr.vmem [resolvable:$true] %s45_s28 }
  0x18   :  { %s1673_s29 = scalar_lea.vmem %s46_s28, 128  ;;  %p1678_p11 = scmp.lt.s32.totalorder %s46_s28, %s46_s28 }
  0x19   :  { %p1674_p10 = scmp.ne.s32.totalorder %s46_s28, %s1673_s29  ;;  %p1679_p12 = scmp.lt.s32.totalorder %s1673_s29, %s1673_s29 }
  0x1b   :  { %p1680_p13 = por %p1679_p12, %p1678_p11 }
  0x1d   :  { %p1681_p0 = pnand %p1680_p13, %p1674_p10 }
  0x1f   :  { %1684 = shalt.err (!%p1681_p0)
}
  0x20   :  { %48 = dma.hbm_to_vmem [thread:$0]  %s2119_s2, 128, %s46_s28, [#allocation6]  }
  0x21   :  { %1705 = dma.done.wait [#allocation3], 128  }
  0x22   :  { %1706 = vsyncadd [#allocation3], 4294967168 }
  0x23   :  { %1707 = dma.done.wait [#allocation6], 256  }
  0x24   :  { %1708 = vsyncadd [#allocation6], 4294967040  ;;  %v1795_v0 = vld [vmem:[#allocation2] sm:$0xff]  ;;  %vm86_vm0 = vcmask 261120   ;;  %v1571_v3 = vld [vmem:[%s2121_s4 + $0x8] sm:$0xff]   ;;  %v1714_v4 = vmov 0.0   ;;  %v77_v58 = vlaneseq }
  0x25   :  { %v85_v1 = vmul.f32 %v1795_v0, %v1795_v0  ;;  %1436 = vmatprep.subr.bf16.mxu1 %v1714_v4  ;;  %vm1715_vm1 = vmmov 0   ;;  %v1572_v5 = vld [vmem:[%s2121_s4] sm:$0xff]   ;;  %1450 = vmatprep.subr.bf16.mxu0 %v1714_v4  ;;  %s1716_s18 = smov 112   ;;  %s1717_s19 = smov 88   ;;  %v1838_v21 = vld [vmem:[#allocation5] sm:$0xff]  ;;  %vm185_vm2 = vcmask 64512  }
  0x26   :  { %1440 = vmatprep.mubr.msk.bf16.mxu1 %vm1715_vm1, %v1714_v4  ;;  %1437 = vmatpush3.bf16.msra.mxu1 %v1571_v3  ;;  %v1324_v10 = vld [vmem:[%s2120_s3] ss:$0 sm:$0xff]  ;;  %s1718_s20 = smov 104   ;;  %s1719_s21 = smov 32   ;;  %v1842_v23 = vld [vmem:[#allocation7] sm:$0xff]  ;;  %vm233_vm3 = vcmask 130048  }
  0x27   :  { %v87_v2 = vsel %vm86_vm0, %v85_v1, 0.0  ;;  %1438 = vmatprep.subr.bf16.mxu1 %v1714_v4  ;;  %1452 = vmatprep.mubr.msk.bf16.mxu0 %vm1715_vm1, %v1714_v4  ;;  %v1325_v14 = vld [vmem:[%s2122_s5] ss:$0 sm:$0xff]  ;;  %s1720_s22 = smov 120   ;;  %s1721_s23 = smov 96   ;;  %v1884_v59 = vshrl.u32 %v77_v58, 7 }
  0x28   :  { %88 = vadd.xlane.f32.xlu0 %v87_v2  ;;  %s1722_s24 = smov 8   ;;  %v1886_v60 = vand.u32 127, %v77_v58  ;;  %s1723_s25 = smov 64   ;;  %vm367_vm5 = vcmask 1043456   ;;  %vm646_vm6 = vcmask 523264  }
  0x29   :  { %s1724_s1 = smov 16   ;;  %s1725_s30 = smov [#allocation8]  }
  0x2a   :  { %1439 = vmatpush3.bf16.msra.mxu1 %v1572_v5  ;;  %vm81_vm4 = vcmp.ge.s32.totalorder %v1884_v59, %v1886_v60  ;;  %s1314_s0 = sshll.u32 %s1725_s30, 4  ;;  %s1315_s0 = int_to_ptr.vmem [resolvable:$true] %s1314_s0 }
  0x2b   :  { %1444 = vmatprep.subr.bf16.mxu1 %v1714_v4  ;;  %s1685_s12 = scalar_lea.vmem %s1315_s0, 128  ;;  %p1690_p2 = scmp.lt.s32.totalorder %s1315_s0, %s1315_s0 }
  0x2c   :  { %p1686_p1 = scmp.ne.s32.totalorder %s1315_s0, %s1685_s12  ;;  %p1691_p3 = scmp.lt.s32.totalorder %s1685_s12, %s1685_s12 }
  0x2e   :  { %p1692_p4 = por %p1691_p3, %p1690_p2 }
  0x30   :  { %p1693_p5 = pnand %p1692_p4, %p1686_p1 }
  0xb1   :  { %v89_v6 = vpop.xlane.xlu0 %88 }
  0xb2   :  { %v91_v7 = vmul.f32 0.03125, %v89_v6 }
  0xb4   :  { %v92_v8 = vadd.f32 1e-06, %v91_v7 }
  0xb6   :  { %1591 = vrsqrt.f32 %v92_v8 }
  0xc3   :  { %v1592_v9 = vpop.eup %1591 }
  0xc4   :  { %v94_v11 = vmul.f32 %v1592_v9, %v1795_v0 }
  0xc6   :  { %v101_v12 = vmul.f32 %v1324_v10, %v94_v11 }
  0xc8   :  { %v102_v13 = vpack.c.bf16 %v101_v12, %v101_v12 }
  0xca   :  { %1441 = vmatmul.mubr.msk.bf16.vlgmr.msra.gmra.mxu1 %vm86_vm0, %v102_v13 }
  0xcb   :  { %1446 = vmatprep.mubr.msk.bf16.mxu1 %vm1715_vm1, %v1714_v4 }
 0x18a   :  { %v163_v15 = vpop.f32.mrf.mxu1 }
 0x18b   :  { %v1824_v16 = vadd.f32 %v1325_v14, %v163_v15 }
 0x18c   :  { %v1442_v17 = vpop.f32.mrf.mxu1 }
 0x18d   :  { %170 = vrot.lane.b32.xlu0 %v1824_v16, %s1716_s18  ;;  %v188_v54 = vmul.f32 %v1824_v16, %v1838_v21 }
 0x18e   :  { %v166_v18 = vpop.f32.mrf.mxu1 }
 0x190   :  { %v1443_v19 = vpop.f32.mrf.mxu1 }
 0x1ff   :  { %v1828_v20 = vpop.permute.xlu0 %170 }
 0x200   :  { %196 = vrot.lane.b32.xlu1 %v1828_v20, %s1717_s19  ;;  %v189_v45 = vmul.f32 %v1828_v20, %v1838_v21 }
 0x204   :  { %202 = vrot.lane.b32.xlu1 %v1828_v20, %s1718_s20 }
 0x208   :  { %194 = vrot.lane.b32.xlu1 %v1824_v16, %s1717_s19 }
 0x20c   :  { %200 = vrot.lane.b32.xlu1 %v1824_v16, %s1718_s20 }
 0x210   :  { %209 = vrot.lane.b32.xlu1 %v1838_v21, %s1719_s21 }
 0x272   :  { %v197_v22 = vpop.permute.xlu1 %196 }
 0x276   :  { %v203_v24 = vpop.permute.xlu1 %202 }
 0x277   :  { %v207_v25 = vsel %vm185_vm2, %v197_v22, %v203_v24 }
 0x278   :  { %v215_v26 = vmul.f32 %v207_v25, %v1842_v23 }
 0x27a   :  { %v195_v27 = vpop.permute.xlu1 %194  ;;  %220 = vrot.lane.b32.xlu1 %v215_v26, %s1719_s21 }
 0x27e   :  { %v201_v28 = vpop.permute.xlu1 %200 }
 0x27f   :  { %v206_v29 = vsel %vm185_vm2, %v195_v27, %v201_v28  ;;  %v360_v27 = vpack.c.bf16 %v1828_v20, %v1828_v20  ;;  %v359_v28 = vpack.c.bf16 %v1824_v16, %v1824_v16 }
 0x280   :  { %v214_v30 = vmul.f32 %v206_v29, %v1842_v23 }
 0x282   :  { %218 = vrot.lane.b32.xlu1 %v214_v30, %s1719_s21  ;;  %v1852_v31 = vpop.permute.xlu1 %209 }
 0x283   :  { %v213_v32 = vmul.f32 %v1852_v31, %v1828_v20  ;;  %v212_v36 = vmul.f32 %v1852_v31, %v1824_v16 }
 0x286   :  { %175 = vrot.lane.b32.xlu1 %v1828_v20, %s1720_s22 }
 0x2ec   :  { %v221_v33 = vpop.permute.xlu1 %220 }
 0x2ed   :  { %v225_v34 = vadd.f32 %v221_v33, %v213_v32 }
 0x2ef   :  { %v229_v35 = vpack.c.bf16 %v225_v34, %v225_v34 }
 0x2f1   :  { %281 = vrot.lane.b32.xlu0 %v229_v35, %s1721_s23 }
 0x2f4   :  { %v219_v37 = vpop.permute.xlu1 %218 }
 0x2f5   :  { %v224_v38 = vadd.f32 %v219_v37, %v212_v36  ;;  %181 = vrot.lane.b32.xlu0 %v1828_v20, %s1722_s24 }
 0x2f7   :  { %v228_v39 = vpack.c.bf16 %v224_v38, %v224_v38 }
 0x2f8   :  { %v176_v42 = vpop.permute.xlu1 %175 }
 0x2f9   :  { %173 = vrot.lane.b32.xlu0 %v1824_v16, %s1720_s22  ;;  %231 = vrot.lane.b32.xlu1 %v228_v39, %s1721_s23 }
 0x2fd   :  { %179 = vrot.lane.b32.xlu1 %v1824_v16, %s1722_s24 }
 0x363   :  { %v282_v40 = vpop.permute.xlu0 %281 }
 0x364   :  { %v287_v41 = vsel %vm233_vm3, %v282_v40, 0  ;;  %v1573_v40 = vld [vmem:[%s2123_s6 + $0x8] sm:$0xff]  }
 0x365   :  { %1451 = vmatpush3.bf16.xpose.msra.mxu0 %v287_v41  ;;  %v1574_v41 = vld [vmem:[%s2123_s6] sm:$0xff]  }
 0x366   :  { %1462 = vmatprep.subr.bf16.mxu0 %v1714_v4 }
 0x367   :  { %v182_v43 = vpop.permute.xlu0 %181 }
 0x368   :  { %v187_v44 = vsel %vm185_vm2, %v176_v42, %v182_v43 }
 0x369   :  { %v191_v46 = vmul.f32 %v187_v44, %v1842_v23 }
 0x36b   :  { %v193_v47 = vadd.f32 %v191_v46, %v189_v45  ;;  %v232_v48 = vpop.permute.xlu1 %231  ;;  %v174_v51 = vpop.permute.xlu0 %173 }
 0x36c   :  { %v238_v49 = vsel %vm233_vm3, %v232_v48, 0 }
 0x36d   :  { %v227_v50 = vpack.c.bf16 %v193_v47, %v193_v47  ;;  %1445 = vmatpush3.bf16.xpose.msra.mxu1 %v238_v49 }
 0x36e   :  { %1456 = vmatprep.subr.bf16.mxu1 %v1714_v4 }
 0x36f   :  { %v180_v52 = vpop.permute.xlu1 %179  ;;  %1453 = vmatmul.mubr.msk.bf16.vlgmr.msra.gmra.mxu0 %vm233_vm3, %v227_v50 }
 0x370   :  { %v186_v53 = vsel %vm185_vm2, %v174_v51, %v180_v52  ;;  %1464 = vmatprep.mubr.msk.bf16.mxu0 %vm1715_vm1, %v1714_v4 }
 0x371   :  { %v190_v55 = vmul.f32 %v186_v53, %v1842_v23 }
 0x373   :  { %v192_v56 = vadd.f32 %v190_v55, %v188_v54 }
 0x375   :  { %v226_v57 = vpack.c.bf16 %v192_v56, %v192_v56 }
 0x377   :  { %1447 = vmatmul.mubr.msk.bf16.vlgmr.msra.gmra.mxu1 %vm233_vm3, %v226_v57 }
 0x378   :  { %1458 = vmatprep.mubr.msk.bf16.mxu1 %vm1715_vm1, %v1714_v4 }
 0x42f   :  { %v323_v61 = vpop.f32.mrf.mxu0 }
 0x430   :  { %v330_v62 = vmul.f32 0.25, %v323_v61 }
 0x431   :  { %v1454_v63 = vpop.f32.mrf.mxu0 }
 0x432   :  { %v334_v1 = vsel %vm81_vm4, %v330_v62, -1e+30  ;;  %v1575_v62 = vld [vmem:[%s2125_s8 + $0x8] sm:$0xff]   ;;  %v1576_v63 = vld [vmem:[%s2125_s8] sm:$0xff]  }
 0x433   :  { %v326_v2 = vpop.f32.mrf.mxu0  ;;  %v338_v3 = vsel %vm185_vm2, %v334_v1, -inf }
 0x434   :  { %339 = vmax.xlane.f32.xlu0 %v338_v3 }
 0x435   :  { %v1455_v5 = vpop.f32.mrf.mxu0 }
 0x436   :  { %v1336_v5 = vld [vmem:[%s2124_s7] ss:$0 sm:$0xff] }
 0x437   :  { %v274_v6 = vpop.f32.mrf.mxu1 }
 0x438   :  { %v329_v7 = vmul.f32 0.25, %v274_v6 }
 0x439   :  { %v1448_v8 = vpop.f32.mrf.mxu1 }
 0x43a   :  { %v333_v9 = vsel %vm81_vm4, %v329_v7, -1e+30 }
 0x43b   :  { %v277_v10 = vpop.f32.mrf.mxu1  ;;  %v335_v11 = vsel %vm185_vm2, %v333_v9, -inf }
 0x43c   :  { %336 = vmax.xlane.f32.xlu1 %v335_v11  ;;  %v1578_v10 = vld [vmem:[%s2126_s9 + $0x10] sm:$0xff]   ;;  %v1579_v11 = vld [vmem:[%s2126_s9 + $0x8] sm:$0xff]  }
 0x43d   :  { %v1449_v12 = vpop.f32.mrf.mxu1 }
 0x43e   :  { %v1580_v12 = vld [vmem:[%s2126_s9] sm:$0xff]  }
 0x4bd   :  { %v340_v13 = vpop.xlane.xlu0 %339 }
 0x4be   :  { %v342_v14 = vsub.f32 %v334_v1, %v340_v13 }
 0x4c0   :  { %v345_v15 = vmul.f32 1.442695, %v342_v14 }
 0x4c2   :  { %1593 = vpow2.f32 %v345_v15 }
 0x4c5   :  { %v337_v17 = vpop.xlane.xlu1 %336 }
 0x4c6   :  { %v341_v18 = vsub.f32 %v333_v9, %v337_v17  ;;  %v1577_v9 = vld [vmem:[%s2126_s9 + $0x18] sm:$0xff]  }
 0x4c8   :  { %v343_v19 = vmul.f32 1.442695, %v341_v18 }
 0x4ca   :  { %1595 = vpow2.f32 %v343_v19 }
 0x4cf   :  { %v1594_v22 = vpop.eup %1593 }
 0x4d0   :  { %v350_v24 = vsel %vm185_vm2, %v1594_v22, 0.0 }
 0x4d1   :  { %351 = vadd.xlane.f32.xlu0 %v350_v24 }
 0x4d7   :  { %v1596_v25 = vpop.eup %1595 }
 0x4d8   :  { %v347_v26 = vsel %vm185_vm2, %v1596_v25, 0.0 }
 0x4d9   :  { %348 = vadd.xlane.f32.xlu1 %v347_v26 }
 0x4e7   :  { %412 = vrot.lane.b32.xlu0 %v360_v27, %s1723_s25 }
 0x4ea   :  { %362 = vrot.lane.b32.xlu1 %v359_v28, %s1723_s25 }
 0x55a   :  { %v352_v29 = vpop.xlane.xlu0 %351 }
 0x55b   :  { %1597 = vrcp.f32 %v352_v29 }
 0x55e   :  { %v413_v30 = vpop.permute.xlu0 %412 }
 0x55f   :  { %v418_v32 = vsel %vm367_vm5, %v413_v30, 0 }
 0x560   :  { %1463 = vmatpush3.bf16.msra.mxu0 %v418_v32 }
 0x561   :  { %1476 = vmatprep.subr.bf16.mxu0 %v1714_v4 }
 0x562   :  { %v349_v33 = vpop.xlane.xlu1 %348 }
 0x563   :  { %1599 = vrcp.f32 %v349_v33 }
 0x566   :  { %v363_v20 = vpop.permute.xlu1 %362 }
 0x567   :  { %v369_v34 = vsel %vm367_vm5, %v363_v20, 0 }
 0x568   :  { %v1598_v35 = vpop.eup %1597  ;;  %1457 = vmatpush3.bf16.msra.mxu1 %v369_v34 }
 0x569   :  { %v356_v36 = vmul.f32 %v1598_v35, %v1594_v22  ;;  %1468 = vmatprep.subr.bf16.mxu1 %v1714_v4 }
 0x56b   :  { %v358_v16 = vpack.c.bf16 %v356_v36, %v356_v36  ;;  %v1581_v36 = vld [vmem:[%s2121_s4 + $0x18] sm:$0xff]  }
 0x56d   :  { %1465 = vmatmul.mubr.msk.bf16.vlgmr.msra.gmra.mxu0 %vm185_vm2, %v358_v16  ;;  %v1582_v16 = vld [vmem:[%s2121_s4 + $0x10] sm:$0xff]  }
 0x56e   :  { %1480 = vmatprep.mubr.msk.bf16.mxu0 %vm1715_vm1, %v1714_v4  ;;  %1477 = vmatpush3.bf16.msra.mxu0 %v1575_v62 }
 0x56f   :  { %1478 = vmatprep.subr.bf16.mxu0 %v1714_v4 }
 0x570   :  { %v1600_v37 = vpop.eup %1599 }
 0x571   :  { %v355_v38 = vmul.f32 %v1600_v37, %v1596_v25 }
 0x572   :  { %1479 = vmatpush3.bf16.msra.mxu0 %v1576_v63 }
 0x573   :  { %v357_v39 = vpack.c.bf16 %v355_v38, %v355_v38  ;;  %1496 = vmatprep.subr.bf16.mxu0 %v1714_v4 }
 0x575   :  { %1459 = vmatmul.mubr.msk.bf16.vlgmr.msra.gmra.mxu1 %vm185_vm2, %v357_v39 }
 0x576   :  { %1472 = vmatprep.mubr.msk.bf16.mxu1 %vm1715_vm1, %v1714_v4  ;;  %1469 = vmatpush3.bf16.msra.mxu1 %v1573_v40 }
 0x577   :  { %1470 = vmatprep.subr.bf16.mxu1 %v1714_v4 }
 0x57a   :  { %1471 = vmatpush3.bf16.msra.mxu1 %v1574_v41  ;;  %v1347_v41 = vld [vmem:[%s2120_s3 + $0x1] ss:$0 sm:$0xff] }
 0x57b   :  { %1484 = vmatprep.subr.bf16.mxu1 %v1714_v4 }
 0x62d   :  { %v454_v42 = vpop.f32.mrf.mxu0 }
 0x62e   :  { %461 = vrot.lane.b32.xlu0 %v454_v42, %s1724_s1 }
 0x62f   :  { %v1466_v43 = vpop.f32.mrf.mxu0 }
 0x631   :  { %v457_v44 = vpop.f32.mrf.mxu0 }
 0x633   :  { %v1467_v45 = vpop.f32.mrf.mxu0 }
 0x634   :  { %v1353_v45 = vld [vmem:[%s2122_s5 + $0x1] ss:$0 sm:$0xff] }
 0x635   :  { %v405_v46 = vpop.f32.mrf.mxu1 }
 0x637   :  { %v1460_v47 = vpop.f32.mrf.mxu1 }
 0x639   :  { %v408_v48 = vpop.f32.mrf.mxu1 }
 0x63b   :  { %v1461_v49 = vpop.f32.mrf.mxu1 }
 0x6a0   :  { %v462_v50 = vpop.permute.xlu0 %461 }
 0x6a1   :  { %v464_v51 = vsel %vm233_vm3, %v405_v46, %v462_v50 }
 0x6a2   :  { %v465_v52 = vpack.c.bf16 %v464_v51, %v464_v51 }
 0x6a4   :  { %1473 = vmatmul.mubr.msk.bf16.vlgmr.msra.gmra.mxu1 %vm86_vm0, %v465_v52 }
 0x6a5   :  { %1492 = vmatprep.mubr.msk.bf16.mxu1 %vm1715_vm1, %v1714_v4  ;;  %1485 = vmatpush3.bf16.msra.mxu1 %v1577_v9 }
 0x6a6   :  { %1486 = vmatprep.subr.bf16.mxu1 %v1714_v4 }
 0x6a9   :  { %1487 = vmatpush3.bf16.msra.mxu1 %v1578_v10 }
 0x6aa   :  { %1488 = vmatprep.subr.bf16.mxu1 %v1714_v4 }
 0x6ad   :  { %1489 = vmatpush3.bf16.msra.mxu1 %v1579_v11 }
 0x6ae   :  { %1490 = vmatprep.subr.bf16.mxu1 %v1714_v4 }
 0x6b1   :  { %1491 = vmatpush3.bf16.msra.mxu1 %v1580_v12 }
 0x6b2   :  { %1510 = vmatprep.subr.bf16.mxu1 %v1714_v4 }
 0x764   :  { %v519_v53 = vpop.f32.mrf.mxu1 }
 0x765   :  { %v520_v54 = vadd.f32 %v519_v53, %v1795_v0 }
 0x766   :  { %v1474_v55 = vpop.f32.mrf.mxu1 }
 0x767   :  { %v526_v56 = vmul.f32 %v520_v54, %v520_v54 }
 0x768   :  { %v522_v57 = vpop.f32.mrf.mxu1 }
 0x769   :  { %v527_v58 = vsel %vm86_vm0, %v526_v56, 0.0 }
 0x76a   :  { %528 = vadd.xlane.f32.xlu1 %v527_v58  ;;  %v1475_v61 = vpop.f32.mrf.mxu1 }
 0x7f3   :  { %v529_v0 = vpop.xlane.xlu1 %528 }
 0x7f4   :  { %v530_v1 = vmul.f32 0.03125, %v529_v0 }
 0x7f6   :  { %v531_v2 = vadd.f32 1e-06, %v530_v1 }
 0x7f8   :  { %1601 = vrsqrt.f32 %v531_v2 }
 0x805   :  { %v1602_v3 = vpop.eup %1601 }
 0x806   :  { %v533_v6 = vmul.f32 %v1602_v3, %v520_v54 }
 0x808   :  { %v540_v7 = vmul.f32 %v1336_v5, %v533_v6 }
 0x80a   :  { %v541_v8 = vpack.c.bf16 %v540_v7, %v540_v7 }
 0x80c   :  { %1481 = vmatmul.mubr.msk.bf16.vlgmr.msra.gmra.mxu0 %vm86_vm0, %v541_v8 }
 0x80d   :  { %1500 = vmatprep.mubr.msk.bf16.mxu0 %vm1715_vm1, %v1714_v4  ;;  %1497 = vmatpush3.bf16.msra.mxu0 %v1581_v36 }
 0x80e   :  { %1498 = vmatprep.subr.bf16.mxu0 %v1714_v4 }
 0x811   :  { %1499 = vmatpush3.bf16.msra.mxu0 %v1582_v16 }
 0x812   :  { %1504 = vmatprep.subr.bf16.mxu0 %v1714_v4 }
 0x8cc   :  { %v595_v13 = vpop.f32.mrf.mxu0 }
 0x8cd   :  { %609 = vrot.lane.b32.xlu0 %v595_v13, %s1723_s25  ;;  %v1340_v18 = vmul.f32 -1.442695, %v595_v13 }
 0x8ce   :  { %v1482_v14 = vpop.f32.mrf.mxu0 }
 0x8cf   :  { %1603 = vpow2.f32 %v1340_v18 }
 0x8d0   :  { %v598_v15 = vpop.f32.mrf.mxu0 }
 0x8d2   :  { %v1483_v17 = vpop.f32.mrf.mxu0 }
 0x8dc   :  { %v1604_v19 = vpop.eup %1603 }
 0x8dd   :  { %v604_v22 = vadd.f32 1.0, %v1604_v19 }
 0x8df   :  { %1605 = vrcp.f32 %v604_v22 }
 0x8ec   :  { %v1606_v24 = vpop.eup %1605 }
 0x8ed   :  { %v607_v25 = vmul.f32 %v1606_v24, %v595_v13 }
 0x93f   :  { %v610_v26 = vpop.permute.xlu0 %609 }
 0x940   :  { %v612_v27 = vmul.f32 %v610_v26, %v607_v25 }
 0x942   :  { %v613_v28 = vpack.c.bf16 %v612_v27, %v612_v27 }
 0x944   :  { %1493 = vmatmul.mubr.msk.bf16.vlgmr.msra.gmra.mxu1 %vm646_vm6, %v613_v28 }
 0x945   :  { %1512 = vmatprep.mubr.msk.bf16.mxu1 %vm1715_vm1, %v1714_v4 }
 0xa04   :  { %v684_v29 = vpop.f32.mrf.mxu1 }
 0xa05   :  { %v1965_v30 = vadd.f32 %v684_v29, %v520_v54 }
 0xa06   :  { %v1494_v32 = vpop.f32.mrf.mxu1 }
 0xa07   :  { %v692_v33 = vmul.f32 %v1965_v30, %v1965_v30 }
 0xa08   :  { %v687_v20 = vpop.f32.mrf.mxu1 }
 0xa09   :  { %v693_v34 = vsel %vm86_vm0, %v692_v33, 0.0 }
 0xa0a   :  { %694 = vadd.xlane.f32.xlu0 %v693_v34  ;;  %v1495_v35 = vpop.f32.mrf.mxu1 }
 0xa93   :  { %v695_v37 = vpop.xlane.xlu0 %694 }
 0xa94   :  { %v696_v38 = vmul.f32 0.03125, %v695_v37 }
 0xa96   :  { %v697_v39 = vadd.f32 1e-06, %v696_v38 }
 0xa98   :  { %1607 = vrsqrt.f32 %v697_v39 }
 0xaa5   :  { %v1608_v40 = vpop.eup %1607 }
 0xaa6   :  { %v699_v42 = vmul.f32 %v1608_v40, %v1965_v30 }
 0xaa8   :  { %v706_v43 = vmul.f32 %v1347_v41, %v699_v42 }
 0xaaa   :  { %v707_v44 = vpack.c.bf16 %v706_v43, %v706_v43 }
 0xaac   :  { %1501 = vmatmul.mubr.msk.bf16.vlgmr.msra.gmra.mxu0 %vm86_vm0, %v707_v44 }
 0xaad   :  { %1506 = vmatprep.mubr.msk.bf16.mxu0 %vm1715_vm1, %v1714_v4 }
 0xb6c   :  { %v770_v46 = vpop.f32.mrf.mxu0 }
 0xb6d   :  { %v1988_v47 = vadd.f32 %v1353_v45, %v770_v46 }
 0xb6e   :  { %v1502_v48 = vpop.f32.mrf.mxu0 }
 0xb6f   :  { %777 = vrot.lane.b32.xlu1 %v1988_v47, %s1716_s18  ;;  %v814_v2 = vmul.f32 %v1988_v47, %v1852_v31  ;;  %v794_v24 = vmul.f32 %v1988_v47, %v1838_v21 }
 0xb70   :  { %v773_v49 = vpop.f32.mrf.mxu0 }
 0xb72   :  { %v1503_v50 = vpop.f32.mrf.mxu0 }
 0xbe1   :  { %v1992_v51 = vpop.permute.xlu1 %777 }
 0xbe2   :  { %808 = vrot.lane.b32.xlu1 %v1992_v51, %s1718_s20  ;;  %802 = vrot.lane.b32.xlu0 %v1992_v51, %s1717_s19  ;;  %v815_v62 = vmul.f32 %v1992_v51, %v1852_v31  ;;  %v795_v13 = vmul.f32 %v1992_v51, %v1838_v21  ;;  %v959_v40 = vpack.c.bf16 %v1992_v51, %v1992_v51 }
 0xbe6   :  { %800 = vrot.lane.b32.xlu1 %v1988_v47, %s1717_s19  ;;  %806 = vrot.lane.b32.xlu0 %v1988_v47, %s1718_s20 }
 0xc54   :  { %v809_v52 = vpop.permute.xlu1 %808  ;;  %v803_v53 = vpop.permute.xlu0 %802 }
 0xc55   :  { %v813_v54 = vsel %vm185_vm2, %v803_v53, %v809_v52  ;;  %v958_v52 = vpack.c.bf16 %v1988_v47, %v1988_v47 }
 0xc56   :  { %v817_v55 = vmul.f32 %v813_v54, %v1842_v23 }
 0xc58   :  { %v801_v56 = vpop.permute.xlu1 %800  ;;  %822 = vrot.lane.b32.xlu1 %v817_v55, %s1719_s21  ;;  %v807_v57 = vpop.permute.xlu0 %806 }
 0xc59   :  { %v812_v58 = vsel %vm185_vm2, %v801_v56, %v807_v57 }
 0xc5a   :  { %v816_v61 = vmul.f32 %v812_v58, %v1842_v23 }
 0xc5c   :  { %820 = vrot.lane.b32.xlu0 %v816_v61, %s1719_s21 }
 0xc60   :  { %782 = vrot.lane.b32.xlu0 %v1992_v51, %s1720_s22 }
 0xcca   :  { %v823_v63 = vpop.permute.xlu1 %822 }
 0xccb   :  { %v827_v0 = vadd.f32 %v823_v63, %v815_v62 }
 0xccd   :  { %v831_v1 = vpack.c.bf16 %v827_v0, %v827_v0  ;;  %v1583_v0 = vld [vmem:[%s2123_s6 + $0x18] sm:$0xff]  }
 0xcce   :  { %v821_v3 = vpop.permute.xlu0 %820 }
 0xccf   :  { %v826_v5 = vadd.f32 %v821_v3, %v814_v2  ;;  %882 = vrot.lane.b32.xlu1 %v831_v1, %s1721_s23  ;;  %v1584_v1 = vld [vmem:[%s2123_s6 + $0x10] sm:$0xff]  }
 0xcd1   :  { %v830_v6 = vpack.c.bf16 %v826_v5, %v826_v5 }
 0xcd2   :  { %v783_v7 = vpop.permute.xlu0 %782 }
 0xcd3   :  { %788 = vrot.lane.b32.xlu1 %v1992_v51, %s1722_s24  ;;  %833 = vrot.lane.b32.xlu0 %v830_v6, %s1721_s23 }
 0xcd7   :  { %780 = vrot.lane.b32.xlu1 %v1988_v47, %s1720_s22  ;;  %786 = vrot.lane.b32.xlu0 %v1988_v47, %s1722_s24 }
 0xd41   :  { %v883_v8 = vpop.permute.xlu1 %882 }
 0xd42   :  { %v888_v31 = vsel %vm233_vm3, %v883_v8, 0 }
 0xd43   :  { %1511 = vmatpush3.bf16.xpose.msra.mxu1 %v888_v31 }
 0xd44   :  { %1522 = vmatprep.subr.bf16.mxu1 %v1714_v4 }
 0xd45   :  { %v789_v9 = vpop.permute.xlu1 %788  ;;  %v834_v10 = vpop.permute.xlu0 %833 }
 0xd46   :  { %v793_v11 = vsel %vm185_vm2, %v783_v7, %v789_v9  ;;  %v839_v12 = vsel %vm233_vm3, %v834_v10, 0 }
 0xd47   :  { %v797_v14 = vmul.f32 %v793_v11, %v1842_v23  ;;  %1505 = vmatpush3.bf16.xpose.msra.mxu0 %v839_v12 }
 0xd48   :  { %1516 = vmatprep.subr.bf16.mxu0 %v1714_v4 }
 0xd49   :  { %v799_v15 = vadd.f32 %v797_v14, %v795_v13  ;;  %v781_v17 = vpop.permute.xlu1 %780  ;;  %v787_v18 = vpop.permute.xlu0 %786 }
 0xd4a   :  { %v792_v19 = vsel %vm185_vm2, %v781_v17, %v787_v18 }
 0xd4b   :  { %v829_v22 = vpack.c.bf16 %v799_v15, %v799_v15  ;;  %v796_v25 = vmul.f32 %v792_v19, %v1842_v23 }
 0xd4d   :  { %v798_v26 = vadd.f32 %v796_v25, %v794_v24  ;;  %1513 = vmatmul.mubr.msk.bf16.vlgmr.msra.gmra.mxu1 %vm233_vm3, %v829_v22  ;;  %v1585_v24 = vld [vmem:[%s2125_s8 + $0x18] sm:$0xff]   ;;  %v1586_v25 = vld [vmem:[%s2125_s8 + $0x10] sm:$0xff]  }
 0xd4e   :  { %1524 = vmatprep.mubr.msk.bf16.mxu1 %vm1715_vm1, %v1714_v4 }
 0xd4f   :  { %v828_v27 = vpack.c.bf16 %v798_v26, %v798_v26 }
 0xd51   :  { %1507 = vmatmul.mubr.msk.bf16.vlgmr.msra.gmra.mxu0 %vm233_vm3, %v828_v27 }
 0xd52   :  { %1518 = vmatprep.mubr.msk.bf16.mxu0 %vm1715_vm1, %v1714_v4 }
 0xe0d   :  { %v924_v28 = vpop.f32.mrf.mxu1 }
 0xe0e   :  { %v931_v29 = vmul.f32 0.25, %v924_v28 }
 0xe0f   :  { %v1514_v32 = vpop.f32.mrf.mxu1 }
 0xe10   :  { %v933_v21 = vsel %vm81_vm4, %v931_v29, -1e+30  ;;  %v1369_v29 = vld [vmem:[%s2124_s7 + $0x1] ss:$0 sm:$0xff] }
 0xe11   :  { %v875_v23 = vpop.f32.mrf.mxu0  ;;  %v927_v33 = vpop.f32.mrf.mxu1  ;;  %v937_v20 = vsel %vm185_vm2, %v933_v21, -inf }
 0xe12   :  { %v930_v34 = vmul.f32 0.25, %v875_v23  ;;  %938 = vmax.xlane.f32.xlu1 %v937_v20  ;;  %v1587_v33 = vld [vmem:[%s2126_s9 + $0x38] sm:$0xff]   ;;  %v1588_v20 = vld [vmem:[%s2126_s9 + $0x30] sm:$0xff]  }
 0xe13   :  { %v1508_v35 = vpop.f32.mrf.mxu0  ;;  %v1515_v36 = vpop.f32.mrf.mxu1 }
 0xe14   :  { %v932_v16 = vsel %vm81_vm4, %v930_v34, -1e+30  ;;  %v1589_v34 = vld [vmem:[%s2126_s9 + $0x28] sm:$0xff]   ;;  %v1590_v35 = vld [vmem:[%s2126_s9 + $0x20] sm:$0xff]  }
 0xe15   :  { %v878_v37 = vpop.f32.mrf.mxu0  ;;  %v934_v38 = vsel %vm185_vm2, %v932_v16, -inf }
 0xe16   :  { %935 = vmax.xlane.f32.xlu0 %v934_v38 }
 0xe17   :  { %v1509_v39 = vpop.f32.mrf.mxu0 }
 0xe23   :  { %1010 = vrot.lane.b32.xlu1 %v959_v40, %s1723_s25 }
 0xe9b   :  { %v939_v41 = vpop.xlane.xlu1 %938 }
 0xe9c   :  { %v941_v42 = vsub.f32 %v933_v21, %v939_v41 }
 0xe9e   :  { %v944_v43 = vmul.f32 1.442695, %v941_v42 }
 0xe9f   :  { %v936_v44 = vpop.xlane.xlu0 %935  ;;  %v1011_v45 = vpop.permute.xlu1 %1010 }
 0xea0   :  { %1609 = vpow2.f32 %v944_v43  ;;  %v940_v46 = vsub.f32 %v932_v16, %v936_v44  ;;  %v1016_v59 = vsel %vm367_vm5, %v1011_v45, 0 }
 0xea1   :  { %1523 = vmatpush3.bf16.msra.mxu1 %v1016_v59 }
 0xea2   :  { %v942_v60 = vmul.f32 1.442695, %v940_v46  ;;  %1536 = vmatprep.subr.bf16.mxu1 %v1714_v4 }
 0xea4   :  { %1611 = vpow2.f32 %v942_v60 }
 0xead   :  { %v1610_v48 = vpop.eup %1609 }
 0xeae   :  { %v949_v49 = vsel %vm185_vm2, %v1610_v48, 0.0 }
 0xeaf   :  { %950 = vadd.xlane.f32.xlu0 %v949_v49 }
 0xeb1   :  { %v1612_v50 = vpop.eup %1611 }
 0xeb2   :  { %v946_v51 = vsel %vm185_vm2, %v1612_v50, 0.0 }
 0xeb3   :  { %947 = vadd.xlane.f32.xlu0 %v946_v51 }
 0xec9   :  { %961 = vrot.lane.b32.xlu0 %v958_v52, %s1723_s25 }
 0xf38   :  { %v951_v53 = vpop.xlane.xlu0 %950 }
 0xf39   :  { %1613 = vrcp.f32 %v951_v53 }
 0xf3c   :  { %v948_v54 = vpop.xlane.xlu0 %947 }
 0xf3d   :  { %1615 = vrcp.f32 %v948_v54 }
 0xf40   :  { %v962_v55 = vpop.permute.xlu0 %961 }
 0xf41   :  { %v967_v56 = vsel %vm367_vm5, %v962_v55, 0 }
 0xf42   :  { %1517 = vmatpush3.bf16.msra.mxu0 %v967_v56  ;;  %v1391_v56 = vld [vmem:[%s2127_s10] ss:$0 sm:$0xff] }
 0xf43   :  { %1528 = vmatprep.subr.bf16.mxu0 %v1714_v4 }
 0xf46   :  { %v1614_v57 = vpop.eup %1613 }
 0xf47   :  { %v955_v58 = vmul.f32 %v1614_v57, %v1610_v48 }
 0xf49   :  { %v957_v61 = vpack.c.bf16 %v955_v58, %v955_v58 }
 0xf4a   :  { %v1616_v62 = vpop.eup %1615 }
 0xf4b   :  { %1525 = vmatmul.mubr.msk.bf16.vlgmr.msra.gmra.mxu1 %vm185_vm2, %v957_v61  ;;  %v954_v63 = vmul.f32 %v1616_v62, %v1612_v50 }
 0xf4c   :  { %1540 = vmatprep.mubr.msk.bf16.mxu1 %vm1715_vm1, %v1714_v4  ;;  %1537 = vmatpush3.bf16.msra.mxu1 %v1585_v24 }
 0xf4d   :  { %v956_v47 = vpack.c.bf16 %v954_v63, %v954_v63  ;;  %1538 = vmatprep.subr.bf16.mxu1 %v1714_v4 }
 0xf4f   :  { %1519 = vmatmul.mubr.msk.bf16.vlgmr.msra.gmra.mxu0 %vm185_vm2, %v956_v47 }
 0xf50   :  { %1532 = vmatprep.mubr.msk.bf16.mxu0 %vm1715_vm1, %v1714_v4  ;;  %1529 = vmatpush3.bf16.msra.mxu0 %v1583_v0 }
 0xf51   :  { %1530 = vmatprep.subr.bf16.mxu0 %v1714_v4  ;;  %1539 = vmatpush3.bf16.msra.mxu1 %v1586_v25 }
 0xf54   :  { %1531 = vmatpush3.bf16.msra.mxu0 %v1584_v1 }
 0xf55   :  { %1544 = vmatprep.subr.bf16.mxu0 %v1714_v4 }
0x100b   :  { %v1052_v2 = vpop.f32.mrf.mxu1 }
0x100c   :  { %1059 = vrot.lane.b32.xlu1 %v1052_v2, %s1724_s1 }
0x100d   :  { %v1526_v3 = vpop.f32.mrf.mxu1 }
0x100f   :  { %v1003_v5 = vpop.f32.mrf.mxu0  ;;  %v1055_v6 = vpop.f32.mrf.mxu1 }
0x1011   :  { %v1520_v7 = vpop.f32.mrf.mxu0  ;;  %v1527_v8 = vpop.f32.mrf.mxu1 }
0x1013   :  { %v1006_v31 = vpop.f32.mrf.mxu0 }
0x1015   :  { %v1521_v9 = vpop.f32.mrf.mxu0 }
0x107e   :  { %v1060_v10 = vpop.permute.xlu1 %1059 }
0x107f   :  { %v1062_v11 = vsel %vm233_vm3, %v1003_v5, %v1060_v10 }
0x1080   :  { %v1063_v12 = vpack.c.bf16 %v1062_v11, %v1062_v11 }
0x1082   :  { %1533 = vmatmul.mubr.msk.bf16.vlgmr.msra.gmra.mxu0 %vm86_vm0, %v1063_v12 }
0x1083   :  { %1552 = vmatprep.mubr.msk.bf16.mxu0 %vm1715_vm1, %v1714_v4  ;;  %1545 = vmatpush3.bf16.msra.mxu0 %v1587_v33 }
0x1084   :  { %1546 = vmatprep.subr.bf16.mxu0 %v1714_v4 }
0x1087   :  { %1547 = vmatpush3.bf16.msra.mxu0 %v1588_v20 }
0x1088   :  { %1548 = vmatprep.subr.bf16.mxu0 %v1714_v4 }
0x108b   :  { %1549 = vmatpush3.bf16.msra.mxu0 %v1589_v34 }
0x108c   :  { %1550 = vmatprep.subr.bf16.mxu0 %v1714_v4 }
0x108f   :  { %1551 = vmatpush3.bf16.msra.mxu0 %v1590_v35 }
0x1142   :  { %v1118_v13 = vpop.f32.mrf.mxu0 }
0x1143   :  { %v1119_v14 = vadd.f32 %v1118_v13, %v1965_v30 }
0x1144   :  { %v1534_v15 = vpop.f32.mrf.mxu0 }
0x1145   :  { %v1126_v17 = vmul.f32 %v1119_v14, %v1119_v14 }
0x1146   :  { %v1121_v18 = vpop.f32.mrf.mxu0 }
0x1147   :  { %v1127_v19 = vsel %vm86_vm0, %v1126_v17, 0.0 }
0x1148   :  { %1128 = vadd.xlane.f32.xlu1 %v1127_v19  ;;  %v1535_v22 = vpop.f32.mrf.mxu0 }
0x11d1   :  { %v1129_v30 = vpop.xlane.xlu1 %1128 }
0x11d2   :  { %v1130_v26 = vmul.f32 0.03125, %v1129_v30 }
0x11d4   :  { %v1131_v27 = vadd.f32 1e-06, %v1130_v26 }
0x11d6   :  { %1617 = vrsqrt.f32 %v1131_v27 }
0x11e3   :  { %v1618_v28 = vpop.eup %1617 }
0x11e4   :  { %v1133_v32 = vmul.f32 %v1618_v28, %v1119_v14 }
0x11e6   :  { %v1140_v21 = vmul.f32 %v1369_v29, %v1133_v32 }
0x11e8   :  { %v1141_v23 = vpack.c.bf16 %v1140_v21, %v1140_v21 }
0x11ea   :  { %1541 = vmatmul.mubr.msk.bf16.vlgmr.msra.gmra.mxu1 %vm86_vm0, %v1141_v23 }
0x12aa   :  { %v1196_v36 = vpop.f32.mrf.mxu1 }
0x12ab   :  { %1210 = vrot.lane.b32.xlu0 %v1196_v36, %s1723_s25  ;;  %v1377_v39 = vmul.f32 -1.442695, %v1196_v36 }
0x12ac   :  { %v1542_v16 = vpop.f32.mrf.mxu1 }
0x12ad   :  { %1619 = vpow2.f32 %v1377_v39 }
0x12ae   :  { %v1199_v37 = vpop.f32.mrf.mxu1 }
0x12b0   :  { %v1543_v38 = vpop.f32.mrf.mxu1 }
0x12ba   :  { %v1620_v40 = vpop.eup %1619 }
0x12bb   :  { %v1205_v41 = vadd.f32 1.0, %v1620_v40 }
0x12bd   :  { %1621 = vrcp.f32 %v1205_v41 }
0x12ca   :  { %v1622_v42 = vpop.eup %1621 }
0x12cb   :  { %v1208_v43 = vmul.f32 %v1622_v42, %v1196_v36 }
0x131d   :  { %v1211_v44 = vpop.permute.xlu0 %1210 }
0x131e   :  { %v1213_v4 = vmul.f32 %v1211_v44, %v1208_v43 }
0x1320   :  { %v1214_v45 = vpack.c.bf16 %v1213_v4, %v1213_v4 }
0x1322   :  { %1553 = vmatmul.mubr.msk.bf16.vlgmr.msra.gmra.mxu0 %vm646_vm6, %v1214_v45 }
0x13e2   :  { %v1285_v46 = vpop.f32.mrf.mxu0 }
0x13e3   :  { %v1286_v59 = vadd.f32 %v1285_v46, %v1119_v14 }
0x13e4   :  { %v1554_v60 = vpop.f32.mrf.mxu0 }
0x13e5   :  { %v1292_v48 = vmul.f32 %v1286_v59, %v1286_v59 }
0x13e6   :  { %v1288_v49 = vpop.f32.mrf.mxu0 }
0x13e7   :  { %v1293_v50 = vsel %vm86_vm0, %v1292_v48, 0.0 }
0x13e8   :  { %1294 = vadd.xlane.f32.xlu0 %v1293_v50  ;;  %v1555_v51 = vpop.f32.mrf.mxu0 }
0x1471   :  { %v1295_v52 = vpop.xlane.xlu0 %1294 }
0x1472   :  { %v1296_v53 = vmul.f32 0.03125, %v1295_v52 }
0x1474   :  { %v1297_v54 = vadd.f32 1e-06, %v1296_v53 }
0x1476   :  { %1623 = vrsqrt.f32 %v1297_v54 }
0x1483   :  { %v1624_v55 = vpop.eup %1623 }
0x1484   :  { %v1299_v57 = vmul.f32 %v1624_v55, %v1286_v59 }
0x1486   :  { %v1306_v58 = vmul.f32 %v1391_v56, %v1299_v57 }
0x1488   :  { %1307 = vst.msk [vmem:[#allocation8] sm:$0xff] %vm86_vm0, %v1306_v58 }
0x1489   :  { %1696 = shalt.err (!%p1693_p5)
}
0x148a   :  { %1317 = dma.vmem_to_hbm [thread:$0]  %s1315_s0, 128, %s2128_s11, [#allocation4]  }
0x148b   :  { %1709 = dma.done.wait [#allocation4], 128  }
0x148c   :  { %1710 = vsyncadd [#allocation4], 4294967168 }
0x148d   :  { %1321 = vsyncpa [#allocation3], 1 }
0x148e   :  { %1322 = vsyncpa [#allocation6], 1 }
0x148f   :  { %1323 = vsyncpa [#allocation4], 1 }

</bundles_post_ra>
